<compile_context>
chip_gen: v6e
topology: v6e:2x2x1
jax: 0.10.0
libtpu: 0.0.40
codegen_flags: <defaults>
</compile_context>

<pallas_src>
import functools

import jax
import jax.numpy as jnp
from jax import lax
from jax.experimental import pallas as pl
from jax.experimental.pallas import tpu as pltpu


def _round_up(x, m):
    return (x + m - 1) // m * m


def _bigru_kernel(lens_ref, xpf_ref, xpb_ref, h0_ref, whh_ref, bhh_ref,
                  outf_ref, outb_ref, hfin_ref, hf_scr, hb_scr,
                  *, time_chunk, num_chunks, hp):
    """grid = (num_chunks,). Each grid step advances the forward GRU over time
    chunk j and the backward GRU over time chunk (num_chunks-1-j), interleaved
    inside one fori_loop so the two independent recurrences overlap on the
    MXU/EUP/VPU.  Hidden states are carried across chunks in VMEM scratch."""
    Tc = time_chunk
    j = pl.program_id(0)
    tbase_f = j * Tc                         # absolute time of local step 0 (fwd chunk)
    tbase_b = (num_chunks - 1 - j) * Tc      # absolute time of local step 0 (bwd chunk)

    lens = lens_ref[...]                     # (Bp, 1) int32, loaded once per chunk

    @pl.when(j == 0)                         # first chunk: load initial hidden states
    def _():
        hf_scr[...] = h0_ref[0]
        hb_scr[...] = h0_ref[1]

    cdt = whh_ref.dtype                      # compute dtype for the recurrent matmul

    def gru_cell(xs, h, w, b):
        # One fused (Bp,Hp) @ (Hp,3Hp) recurrent matmul, f32 accumulation;
        # gate slices [0:Hp],[Hp:2Hp],[2Hp:3Hp] are lane-tile aligned (Hp % 128 == 0).
        pre = jnp.dot(h.astype(cdt), w, preferred_element_type=jnp.float32) + b
        r = jax.nn.sigmoid(xs[:, 0 * hp:1 * hp] + pre[:, 0 * hp:1 * hp])
        z = jax.nn.sigmoid(xs[:, 1 * hp:2 * hp] + pre[:, 1 * hp:2 * hp])
        # b_hn stays inside r * (W_hh h + b_hn), matching PyTorch's GRU.
        n = jnp.tanh(xs[:, 2 * hp:3 * hp] + r * pre[:, 2 * hp:3 * hp])
        return (1.0 - z) * n + z * h

    def step(s, carry):
        h_f, h_b = carry
        # ---- forward direction: local step s, absolute time tbase_f + s
        cand_f = gru_cell(xpf_ref[s], h_f, whh_ref[0], bhh_ref[0])
        m_f = (tbase_f + s) < lens                              # (Bp,1) bool
        outf_ref[s] = jnp.where(m_f, cand_f, 0.0).astype(outf_ref.dtype)
        h_f = jnp.where(m_f, cand_f, h_f)                       # freeze past length
        # ---- backward direction: local step Tc-1-s (time runs in reverse)
        sb = Tc - 1 - s
        cand_b = gru_cell(xpb_ref[sb], h_b, whh_ref[1], bhh_ref[1])
        m_b = (tbase_b + sb) < lens
        outb_ref[sb] = jnp.where(m_b, cand_b, 0.0).astype(outb_ref.dtype)
        h_b = jnp.where(m_b, cand_b, h_b)
        return h_f, h_b

    h_f, h_b = lax.fori_loop(0, Tc, step, (hf_scr[...], hb_scr[...]),
                             unroll=min(Tc, 4))                 # partial unroll, no spills
    hf_scr[...] = h_f
    hb_scr[...] = h_b

    @pl.when(j == num_chunks - 1)            # both directions finish on the last chunk
    def _():
        hfin_ref[0] = h_f
        hfin_ref[1] = h_b


def encoder_rnn_forward(input_seq, input_lengths, params, hidden=None, *,
                        time_chunk=32, io_dtype=jnp.bfloat16):
    """Pallas implementation of EncoderRNN.forward."""
    emb = params["embedding"].astype(jnp.float32)        # (V, H)
    V, H = emb.shape
    T, B = input_seq.shape
    wih = params["w_ih"].astype(jnp.float32)              # (2, H, 3H), gate cols [r|z|n]
    whh = params["w_hh"].astype(jnp.float32)              # (2, H, 3H)
    bih = params["b_ih"].astype(jnp.float32)              # (2, 1, 3H)
    bhh = params["b_hh"].astype(jnp.float32)              # (2, 1, 3H)

    Hp = _round_up(H, 128)                                 # lane-dense last dim
    bsub = 8 if jnp.dtype(io_dtype).itemsize >= 4 else 16  # full (packed) sublane groups
    Bp = _round_up(B, bsub)
    Tc = max(1, min(time_chunk, T))
    T_pad = _round_up(T, Tc)
    nc = T_pad // Tc

    # ---- hoisted, time-invariant input projection done directly on the gathered
    # embeddings (no vocab-sized table): xp[d] = emb[seq] @ W_ih[d] + b_ih[d].
    x = emb[input_seq]                                              # (T, B, H)
    xp = jnp.einsum("tbh,dhk->dtbk", x, wih) + bih[:, None]         # (2, T, B, 3H)
    xp = xp.reshape(2, T, B, 3, H)                                  # per-gate lane padding
    xp = jnp.pad(xp, ((0, 0), (0, T_pad - T), (0, Bp - B), (0, 0), (0, Hp - H)))
    xp = xp.reshape(2, T_pad, Bp, 3 * Hp).astype(io_dtype)          # bf16 HBM stream
    xp_f, xp_b = xp[0], xp[1]

    # ---- recurrent weights packed [r|z|n] along lanes, per-gate padding to Hp.
    whh_p = whh.reshape(2, H, 3, H)
    whh_p = jnp.pad(whh_p, ((0, 0), (0, Hp - H), (0, 0), (0, Hp - H)))
    whh_p = whh_p.reshape(2, Hp, 3 * Hp).astype(io_dtype)           # (2, Hp, 3Hp)
    bhh_p = jnp.pad(bhh.reshape(2, 3, H), ((0, 0), (0, 0), (0, Hp - H)))
    bhh_p = bhh_p.reshape(2, 1, 3 * Hp)                             # (2, 1, 3Hp) f32

    if hidden is None:
        hidden = jnp.zeros((2, B, H), jnp.float32)
    h0 = jnp.pad(hidden.astype(jnp.float32), ((0, 0), (0, Bp - B), (0, Hp - H)))
    lens = jnp.pad(input_lengths.astype(jnp.int32), (0, Bp - B)).reshape(Bp, 1)

    kernel = functools.partial(_bigru_kernel, time_chunk=Tc, num_chunks=nc, hp=Hp)

    out_f, out_b, hfin = pl.pallas_call(
        kernel,
        out_shape=(jax.ShapeDtypeStruct((T_pad, Bp, Hp), io_dtype),
                   jax.ShapeDtypeStruct((T_pad, Bp, Hp), io_dtype),
                   jax.ShapeDtypeStruct((2, Bp, Hp), jnp.float32)),
        grid_spec=pltpu.PrefetchScalarGridSpec(
            num_scalar_prefetch=0,
            grid=(nc,),
            in_specs=[
                pl.BlockSpec((Bp, 1), lambda j: (0, 0)),                      # lengths
                pl.BlockSpec((Tc, Bp, 3 * Hp), lambda j: (j, 0, 0)),          # fwd xp chunk
                pl.BlockSpec((Tc, Bp, 3 * Hp), lambda j: (nc - 1 - j, 0, 0)), # bwd xp chunk
                pl.BlockSpec((2, Bp, Hp), lambda j: (0, 0, 0)),               # h0 (both dirs)
                pl.BlockSpec((2, Hp, 3 * Hp), lambda j: (0, 0, 0)),           # W_hh (both dirs)
                pl.BlockSpec((2, 1, 3 * Hp), lambda j: (0, 0, 0)),            # b_hh (both dirs)
            ],
            out_specs=(
                pl.BlockSpec((Tc, Bp, Hp), lambda j: (j, 0, 0)),              # fwd outputs
                pl.BlockSpec((Tc, Bp, Hp), lambda j: (nc - 1 - j, 0, 0)),     # bwd outputs
                pl.BlockSpec((2, Bp, Hp), lambda j: (0, 0, 0)),               # final hidden
            ),
            scratch_shapes=[pltpu.VMEM((Bp, Hp), jnp.float32),                # carried h (fwd)
                            pltpu.VMEM((Bp, Hp), jnp.float32)],               # carried h (bwd)
        ),
        compiler_params=pltpu.CompilerParams(
            dimension_semantics=("arbitrary",),              # time chunks are sequential
            vmem_limit_bytes=48 * 1024 * 1024),              # fits v7x 64 MiB/core budget
    )(lens, xp_f, xp_b, h0, whh_p, bhh_p)

    # Sum of the two directions: one fused XLA elementwise add on the (bf16) streams.
    outputs = (out_f.astype(jnp.float32) + out_b.astype(jnp.float32))[:T, :B, :H]
    hidden_out = hfin[:, :B, :H]
    return outputs, hidden_out


# ----------------------- pure-JAX reference (for checking) ---------------------
def _ref_gru_dir(x, lens, wih, whh, bih, bhh, reverse, H):
    T, B, _ = x.shape
    h = jnp.zeros((B, H), jnp.float32)
    outs = jnp.zeros((T, B, H), jnp.float32)
    order = range(T - 1, -1, -1) if reverse else range(T)
    for t in order:
        xp = x[t] @ wih + bih
        hp = h @ whh + bhh
        r = jax.nn.sigmoid(xp[:, :H] + hp[:, :H])
        z = jax.nn.sigmoid(xp[:, H:2 * H] + hp[:, H:2 * H])
        n = jnp.tanh(xp[:, 2 * H:] + r * hp[:, 2 * H:])
        hn = (1.0 - z) * n + z * h
        m = (t < lens).astype(jnp.float32)[:, None]
        h = m * hn + (1.0 - m) * h
        outs = outs.at[t].set(m * hn)
    return outs, h


def _ref_forward(input_seq, lens, params):
    emb = params["embedding"]
    H = emb.shape[1]
    x = emb[input_seq].astype(jnp.float32)
    of, hf = _ref_gru_dir(x, lens, params["w_ih"][0], params["w_hh"][0],
                          params["b_ih"][0, 0], params["b_hh"][0, 0], False, H)
    ob, hb = _ref_gru_dir(x, lens, params["w_ih"][1], params["w_hh"][1],
                          params["b_ih"][1, 0], params["b_hh"][1, 0], True, H)
    return of + ob, jnp.stack([hf, hb], axis=0)


# ------------------------------------ main -------------------------------------
if __name__ == "__main__":
    V, H, T, B = 50, 32, 8, 4   # vocab, hidden_size, seq_len, batch

    key = jax.random.PRNGKey(0)
    k_emb, k_wih, k_whh, k_bih, k_bhh, k_seq = jax.random.split(key, 6)
    scale = 1.0 / jnp.sqrt(jnp.float32(H))

    params = {
        # nn.Embedding(voc.num_words, hidden_size)
        "embedding": jax.random.normal(k_emb, (V, H), jnp.float32),
        # nn.GRU(H, H, 1, bidirectional=True): weights stored pre-transposed (H, 3H),
        # gate order [r, z, n]; axis 0 = direction (0 fwd, 1 bwd).
        "w_ih": jax.random.uniform(k_wih, (2, H, 3 * H), jnp.float32, -scale, scale),
        "w_hh": jax.random.uniform(k_whh, (2, H, 3 * H), jnp.float32, -scale, scale),
        "b_ih": jax.random.uniform(k_bih, (2, 1, 3 * H), jnp.float32, -scale, scale),
        "b_hh": jax.random.uniform(k_bhh, (2, 1, 3 * H), jnp.float32, -scale, scale),
    }

    input_seq = jax.random.randint(k_seq, (T, B), 0, V, jnp.int32)       # (T, B)
    input_lengths = jnp.array([8, 7, 5, 3], jnp.int32)                    # sorted desc

    ref_out, ref_hid = _ref_forward(input_seq, input_lengths, params)

    # Full-precision path: tight numerical check of the kernel math / masking.
    fwd_f32 = jax.jit(functools.partial(encoder_rnn_forward,
                                        io_dtype=jnp.float32, time_chunk=4))
    out32, hid32 = jax.block_until_ready(fwd_f32(input_seq, input_lengths, params))
    assert out32.shape == (T, B, H) and hid32.shape == (2, B, H)
    assert jnp.allclose(out32, ref_out, atol=1e-4, rtol=1e-4)
    assert jnp.allclose(hid32, ref_hid, atol=1e-4, rtol=1e-4)

    # Default bf16-stream path (bandwidth-optimized): looser tolerance.
    fwd_bf16 = jax.jit(functools.partial(encoder_rnn_forward, time_chunk=4))
    out16, hid16 = jax.block_until_ready(fwd_bf16(input_seq, input_lengths, params))
    assert out16.shape == (T, B, H) and hid16.shape == (2, B, H)
    assert jnp.allclose(out16, ref_out, atol=5e-2, rtol=5e-2)
    assert jnp.allclose(hid16, ref_hid, atol=5e-2, rtol=5e-2)

    print("KERNEL_OK")
</pallas_src>

<mosaic_0001>
module attributes {stable_mosaic.version = 11 : i64} {
  func.func @_bigru_kernel(%arg0: i32, %arg1: memref<8x1xi32, #tpu.memory_space<vmem>>, %arg2: memref<4x8x384xf32, #tpu.memory_space<vmem>>, %arg3: memref<4x8x384xf32, #tpu.memory_space<vmem>>, %arg4: memref<2x8x128xf32, #tpu.memory_space<vmem>>, %arg5: memref<2x128x384xf32, #tpu.memory_space<vmem>>, %arg6: memref<2x1x384xf32, #tpu.memory_space<vmem>>, %arg7: memref<4x8x128xf32, #tpu.memory_space<vmem>>, %arg8: memref<4x8x128xf32, #tpu.memory_space<vmem>>, %arg9: memref<2x8x128xf32, #tpu.memory_space<vmem>>, %arg10: memref<8x128xf32, #tpu.memory_space<vmem>>, %arg11: memref<8x128xf32, #tpu.memory_space<vmem>>) attributes {dimension_semantics = [#tpu.dimension_semantics<arbitrary>], iteration_bounds = array<i64: 2>, scalar_prefetch = 0 : i64, scratch_operands = 2 : i64, tpu.core_type = #tpu.core_type<tc>, window_params = [{pipeline_mode = #tpu.pipeline_mode<synchronous>, transform_indices = @transform_0, window_bounds = array<i64: 8, 1>}, {transform_indices = @transform_1, window_bounds = array<i64: 4, 8, 384>}, {transform_indices = @transform_2, window_bounds = array<i64: 4, 8, 384>}, {pipeline_mode = #tpu.pipeline_mode<synchronous>, transform_indices = @transform_3, window_bounds = array<i64: 2, 8, 128>}, {pipeline_mode = #tpu.pipeline_mode<synchronous>, transform_indices = @transform_4, window_bounds = array<i64: 2, 128, 384>}, {pipeline_mode = #tpu.pipeline_mode<synchronous>, transform_indices = @transform_5, window_bounds = array<i64: 2, 1, 384>}, {transform_indices = @transform_6, window_bounds = array<i64: 4, 8, 128>}, {transform_indices = @transform_7, window_bounds = array<i64: 4, 8, 128>}, {pipeline_mode = #tpu.pipeline_mode<synchronous>, transform_indices = @transform_8, window_bounds = array<i64: 2, 8, 128>}]} {
    %c4_i32 = arith.constant 4 : i32
    %0 = arith.muli %arg0, %c4_i32 : i32
    %c1_i32 = arith.constant 1 : i32
    %1 = arith.subi %c1_i32, %arg0 : i32
    %c4_i32_0 = arith.constant 4 : i32
    %2 = arith.muli %1, %c4_i32_0 : i32
    %c0 = arith.constant 0 : index
    %c0_1 = arith.constant 0 : index
    %3 = vector.load %arg1[%c0, %c0_1] : memref<8x1xi32, #tpu.memory_space<vmem>>, vector<8x1xi32>
    %c0_i32 = arith.constant 0 : i32
    %4 = arith.cmpi eq, %arg0, %c0_i32 : i32
    %5 = arith.extui %4 : i1 to i32
    %c0_i32_2 = arith.constant 0 : i32
    %6 = arith.cmpi ne, %5, %c0_i32_2 : i32
    scf.if %6 {
      %c0_138 = arith.constant 0 : index
      %c0_139 = arith.constant 0 : index
      %c0_140 = arith.constant 0 : index
      %418 = vector.load %arg4[%c0_138, %c0_139, %c0_140] : memref<2x8x128xf32, #tpu.memory_space<vmem>>, vector<1x8x128xf32>
      %419 = vector.shape_cast %418 : vector<1x8x128xf32> to vector<8x128xf32>
      %c0_141 = arith.constant 0 : index
      %c0_142 = arith.constant 0 : index
      %420 = vector.load %arg10[%c0_141, %c0_142] : memref<8x128xf32, #tpu.memory_space<vmem>>, vector<8x128xf32>
      tpu.vector_store %arg10[%c0_141, %c0_142], %419 {strides = array<i32>} : memref<8x128xf32, #tpu.memory_space<vmem>>, vector<8x128xf32>,
      %c1_143 = arith.constant 1 : index
      %c0_144 = arith.constant 0 : index
      %c0_145 = arith.constant 0 : index
      %421 = vector.load %arg4[%c1_143, %c0_144, %c0_145] : memref<2x8x128xf32, #tpu.memory_space<vmem>>, vector<1x8x128xf32>
      %422 = vector.shape_cast %421 : vector<1x8x128xf32> to vector<8x128xf32>
      %c0_146 = arith.constant 0 : index
      %c0_147 = arith.constant 0 : index
      %423 = vector.load %arg11[%c0_146, %c0_147] : memref<8x128xf32, #tpu.memory_space<vmem>>, vector<8x128xf32>
      tpu.vector_store %arg11[%c0_146, %c0_147], %422 {strides = array<i32>} : memref<8x128xf32, #tpu.memory_space<vmem>>, vector<8x128xf32>,
    } else {
    }
    %c0_3 = arith.constant 0 : index
    %c0_4 = arith.constant 0 : index
    %7 = vector.load %arg10[%c0_3, %c0_4] : memref<8x128xf32, #tpu.memory_space<vmem>>, vector<8x128xf32>
    %c0_5 = arith.constant 0 : index
    %c0_6 = arith.constant 0 : index
    %8 = vector.load %arg11[%c0_5, %c0_6] : memref<8x128xf32, #tpu.memory_space<vmem>>, vector<8x128xf32>
    %c0_i32_7 = arith.constant 0 : i32
    %9 = arith.index_cast %c0_i32_7 : i32 to index
    %c0_8 = arith.constant 0 : index
    %c0_9 = arith.constant 0 : index
    %10 = vector.load %arg2[%9, %c0_8, %c0_9] : memref<4x8x384xf32, #tpu.memory_space<vmem>>, vector<1x8x384xf32>
    %11 = vector.shape_cast %10 : vector<1x8x384xf32> to vector<8x384xf32>
    %c0_10 = arith.constant 0 : index
    %c0_11 = arith.constant 0 : index
    %c0_12 = arith.constant 0 : index
    %12 = vector.load %arg5[%c0_10, %c0_11, %c0_12] : memref<2x128x384xf32, #tpu.memory_space<vmem>>, vector<1x128x384xf32>
    %13 = vector.shape_cast %12 : vector<1x128x384xf32> to vector<128x384xf32>
    %c0_13 = arith.constant 0 : index
    %c0_14 = arith.constant 0 : index
    %c0_15 = arith.constant 0 : index
    %14 = vector.load %arg6[%c0_13, %c0_14, %c0_15] : memref<2x1x384xf32, #tpu.memory_space<vmem>>, vector<1x1x384xf32>
    %15 = vector.shape_cast %14 : vector<1x1x384xf32> to vector<1x384xf32>
    %cst = arith.constant dense<0.000000e+00> : vector<8x384xf32>
    %16 = tpu.matmul %7, %13, %cst {dimension_numbers = #tpu.dot_dimension_numbers<[1], [0], [0], [1], [0, 0, 1, 1], [], []>} : vector<8x128xf32>, vector<128x384xf32>, vector<8x384xf32> -> vector<8x384xf32>
    %17 = vector.broadcast %15 : vector<1x384xf32> to vector<8x384xf32>
    %18 = arith.addf %16, %17 : vector<8x384xf32>
    %19 = vector.extract_strided_slice %11 {offsets = [0, 0], sizes = [8, 128], strides = [1, 1]} : vector<8x384xf32> to vector<8x128xf32>
    %20 = vector.extract_strided_slice %18 {offsets = [0, 0], sizes = [8, 128], strides = [1, 1]} : vector<8x384xf32> to vector<8x128xf32>
    %21 = arith.addf %19, %20 : vector<8x128xf32>
    %22 = arith.negf %21 : vector<8x128xf32>
    %23 = math.exp %22 : vector<8x128xf32>
    %cst_16 = arith.constant 1.000000e+00 : f32
    %24 = vector.broadcast %cst_16 : f32 to vector<8x128xf32>
    %25 = arith.addf %24, %23 : vector<8x128xf32>
    %26 = arith.divf %24, %25 : vector<8x128xf32>
    %27 = vector.extract_strided_slice %11 {offsets = [0, 128], sizes = [8, 128], strides = [1, 1]} : vector<8x384xf32> to vector<8x128xf32>
    %28 = vector.extract_strided_slice %18 {offsets = [0, 128], sizes = [8, 128], strides = [1, 1]} : vector<8x384xf32> to vector<8x128xf32>
    %29 = arith.addf %27, %28 : vector<8x128xf32>
    %30 = arith.negf %29 : vector<8x128xf32>
    %31 = math.exp %30 : vector<8x128xf32>
    %cst_17 = arith.constant 1.000000e+00 : f32
    %32 = vector.broadcast %cst_17 : f32 to vector<8x128xf32>
    %33 = arith.addf %32, %31 : vector<8x128xf32>
    %34 = arith.divf %32, %33 : vector<8x128xf32>
    %35 = vector.extract_strided_slice %11 {offsets = [0, 256], sizes = [8, 128], strides = [1, 1]} : vector<8x384xf32> to vector<8x128xf32>
    %36 = vector.extract_strided_slice %18 {offsets = [0, 256], sizes = [8, 128], strides = [1, 1]} : vector<8x384xf32> to vector<8x128xf32>
    %37 = arith.mulf %26, %36 : vector<8x128xf32>
    %38 = arith.addf %35, %37 : vector<8x128xf32>
    %39 = math.tanh %38 : vector<8x128xf32>
    %cst_18 = arith.constant 1.000000e+00 : f32
    %40 = vector.broadcast %cst_18 : f32 to vector<8x128xf32>
    %41 = arith.subf %40, %34 : vector<8x128xf32>
    %42 = arith.mulf %41, %39 : vector<8x128xf32>
    %43 = arith.mulf %34, %7 : vector<8x128xf32>
    %44 = arith.addf %42, %43 : vector<8x128xf32>
    %45 = arith.addi %0, %c0_i32_7 : i32
    %46 = vector.broadcast %45 : i32 to vector<8x1xi32>
    %47 = arith.cmpi slt, %46, %3 : vector<8x1xi32>
    %cst_19 = arith.constant 0.000000e+00 : f32
    %48 = vector.shape_cast %47 : vector<8x1xi1> to vector<8x1xi1>
    %49 = vector.broadcast %48 : vector<8x1xi1> to vector<8x128xi1>
    %50 = vector.broadcast %cst_19 : f32 to vector<8x128xf32>
    %51 = arith.select %49, %44, %50 : vector<8x128xi1>, vector<8x128xf32>
    %52 = arith.index_cast %c0_i32_7 : i32 to index
    %c0_20 = arith.constant 0 : index
    %c0_21 = arith.constant 0 : index
    %53 = vector.load %arg7[%52, %c0_20, %c0_21] : memref<4x8x128xf32, #tpu.memory_space<vmem>>, vector<1x8x128xf32>
    %54 = vector.shape_cast %53 : vector<1x8x128xf32> to vector<8x128xf32>
    %55 = vector.shape_cast %51 : vector<8x128xf32> to vector<1x8x128xf32>
    tpu.vector_store %arg7[%52, %c0_20, %c0_21], %55 {strides = array<i32>} : memref<4x8x128xf32, #tpu.memory_space<vmem>>, vector<1x8x128xf32>,
    %56 = vector.shape_cast %47 : vector<8x1xi1> to vector<8x1xi1>
    %57 = vector.broadcast %56 : vector<8x1xi1> to vector<8x128xi1>
    %58 = arith.select %57, %44, %7 : vector<8x128xi1>, vector<8x128xf32>
    %c3_i32 = arith.constant 3 : i32
    %59 = arith.subi %c3_i32, %c0_i32_7 : i32
    %60 = arith.index_cast %59 : i32 to index
    %c0_22 = arith.constant 0 : index
    %c0_23 = arith.constant 0 : index
    %61 = vector.load %arg3[%60, %c0_22, %c0_23] : memref<4x8x384xf32, #tpu.memory_space<vmem>>, vector<1x8x384xf32>
    %62 = vector.shape_cast %61 : vector<1x8x384xf32> to vector<8x384xf32>
    %c1 = arith.constant 1 : index
    %c0_24 = arith.constant 0 : index
    %c0_25 = arith.constant 0 : index
    %63 = vector.load %arg5[%c1, %c0_24, %c0_25] : memref<2x128x384xf32, #tpu.memory_space<vmem>>, vector<1x128x384xf32>
    %64 = vector.shape_cast %63 : vector<1x128x384xf32> to vector<128x384xf32>
    %c1_26 = arith.constant 1 : index
    %c0_27 = arith.constant 0 : index
    %c0_28 = arith.constant 0 : index
    %65 = vector.load %arg6[%c1_26, %c0_27, %c0_28] : memref<2x1x384xf32, #tpu.memory_space<vmem>>, vector<1x1x384xf32>
    %66 = vector.shape_cast %65 : vector<1x1x384xf32> to vector<1x384xf32>
    %cst_29 = arith.constant dense<0.000000e+00> : vector<8x384xf32>
    %67 = tpu.matmul %8, %64, %cst_29 {dimension_numbers = #tpu.dot_dimension_numbers<[1], [0], [0], [1], [0, 0, 1, 1], [], []>} : vector<8x128xf32>, vector<128x384xf32>, vector<8x384xf32> -> vector<8x384xf32>
    %68 = vector.broadcast %66 : vector<1x384xf32> to vector<8x384xf32>
    %69 = arith.addf %67, %68 : vector<8x384xf32>
    %70 = vector.extract_strided_slice %62 {offsets = [0, 0], sizes = [8, 128], strides = [1, 1]} : vector<8x384xf32> to vector<8x128xf32>
    %71 = vector.extract_strided_slice %69 {offsets = [0, 0], sizes = [8, 128], strides = [1, 1]} : vector<8x384xf32> to vector<8x128xf32>
    %72 = arith.addf %70, %71 : vector<8x128xf32>
    %73 = arith.negf %72 : vector<8x128xf32>
    %74 = math.exp %73 : vector<8x128xf32>
    %cst_30 = arith.constant 1.000000e+00 : f32
    %75 = vector.broadcast %cst_30 : f32 to vector<8x128xf32>
    %76 = arith.addf %75, %74 : vector<8x128xf32>
    %77 = arith.divf %75, %76 : vector<8x128xf32>
    %78 = vector.extract_strided_slice %62 {offsets = [0, 128], sizes = [8, 128], strides = [1, 1]} : vector<8x384xf32> to vector<8x128xf32>
    %79 = vector.extract_strided_slice %69 {offsets = [0, 128], sizes = [8, 128], strides = [1, 1]} : vector<8x384xf32> to vector<8x128xf32>
    %80 = arith.addf %78, %79 : vector<8x128xf32>
    %81 = arith.negf %80 : vector<8x128xf32>
    %82 = math.exp %81 : vector<8x128xf32>
    %cst_31 = arith.constant 1.000000e+00 : f32
    %83 = vector.broadcast %cst_31 : f32 to vector<8x128xf32>
    %84 = arith.addf %83, %82 : vector<8x128xf32>
    %85 = arith.divf %83, %84 : vector<8x128xf32>
    %86 = vector.extract_strided_slice %62 {offsets = [0, 256], sizes = [8, 128], strides = [1, 1]} : vector<8x384xf32> to vector<8x128xf32>
    %87 = vector.extract_strided_slice %69 {offsets = [0, 256], sizes = [8, 128], strides = [1, 1]} : vector<8x384xf32> to vector<8x128xf32>
    %88 = arith.mulf %77, %87 : vector<8x128xf32>
    %89 = arith.addf %86, %88 : vector<8x128xf32>
    %90 = math.tanh %89 : vector<8x128xf32>
    %cst_32 = arith.constant 1.000000e+00 : f32
    %91 = vector.broadcast %cst_32 : f32 to vector<8x128xf32>
    %92 = arith.subf %91, %85 : vector<8x128xf32>
    %93 = arith.mulf %92, %90 : vector<8x128xf32>
    %94 = arith.mulf %85, %8 : vector<8x128xf32>
    %95 = arith.addf %93, %94 : vector<8x128xf32>
    %96 = arith.addi %2, %59 : i32
    %97 = vector.broadcast %96 : i32 to vector<8x1xi32>
    %98 = arith.cmpi slt, %97, %3 : vector<8x1xi32>
    %cst_33 = arith.constant 0.000000e+00 : f32
    %99 = vector.shape_cast %98 : vector<8x1xi1> to vector<8x1xi1>
    %100 = vector.broadcast %99 : vector<8x1xi1> to vector<8x128xi1>
    %101 = vector.broadcast %cst_33 : f32 to vector<8x128xf32>
    %102 = arith.select %100, %95, %101 : vector<8x128xi1>, vector<8x128xf32>
    %103 = arith.index_cast %59 : i32 to index
    %c0_34 = arith.constant 0 : index
    %c0_35 = arith.constant 0 : index
    %104 = vector.load %arg8[%103, %c0_34, %c0_35] : memref<4x8x128xf32, #tpu.memory_space<vmem>>, vector<1x8x128xf32>
    %105 = vector.shape_cast %104 : vector<1x8x128xf32> to vector<8x128xf32>
    %106 = vector.shape_cast %102 : vector<8x128xf32> to vector<1x8x128xf32>
    tpu.vector_store %arg8[%103, %c0_34, %c0_35], %106 {strides = array<i32>} : memref<4x8x128xf32, #tpu.memory_space<vmem>>, vector<1x8x128xf32>,
    %107 = vector.shape_cast %98 : vector<8x1xi1> to vector<8x1xi1>
    %108 = vector.broadcast %107 : vector<8x1xi1> to vector<8x128xi1>
    %109 = arith.select %108, %95, %8 : vector<8x128xi1>, vector<8x128xf32>
    %c1_i32_36 = arith.constant 1 : i32
    %110 = arith.index_cast %c1_i32_36 : i32 to index
    %c0_37 = arith.constant 0 : index
    %c0_38 = arith.constant 0 : index
    %111 = vector.load %arg2[%110, %c0_37, %c0_38] : memref<4x8x384xf32, #tpu.memory_space<vmem>>, vector<1x8x384xf32>
    %112 = vector.shape_cast %111 : vector<1x8x384xf32> to vector<8x384xf32>
    %c0_39 = arith.constant 0 : index
    %c0_40 = arith.constant 0 : index
    %c0_41 = arith.constant 0 : index
    %113 = vector.load %arg5[%c0_39, %c0_40, %c0_41] : memref<2x128x384xf32, #tpu.memory_space<vmem>>, vector<1x128x384xf32>
    %114 = vector.shape_cast %113 : vector<1x128x384xf32> to vector<128x384xf32>
    %c0_42 = arith.constant 0 : index
    %c0_43 = arith.constant 0 : index
    %c0_44 = arith.constant 0 : index
    %115 = vector.load %arg6[%c0_42, %c0_43, %c0_44] : memref<2x1x384xf32, #tpu.memory_space<vmem>>, vector<1x1x384xf32>
    %116 = vector.shape_cast %115 : vector<1x1x384xf32> to vector<1x384xf32>
    %cst_45 = arith.constant dense<0.000000e+00> : vector<8x384xf32>
    %117 = tpu.matmul %58, %114, %cst_45 {dimension_numbers = #tpu.dot_dimension_numbers<[1], [0], [0], [1], [0, 0, 1, 1], [], []>} : vector<8x128xf32>, vector<128x384xf32>, vector<8x384xf32> -> vector<8x384xf32>
    %118 = vector.broadcast %116 : vector<1x384xf32> to vector<8x384xf32>
    %119 = arith.addf %117, %118 : vector<8x384xf32>
    %120 = vector.extract_strided_slice %112 {offsets = [0, 0], sizes = [8, 128], strides = [1, 1]} : vector<8x384xf32> to vector<8x128xf32>
    %121 = vector.extract_strided_slice %119 {offsets = [0, 0], sizes = [8, 128], strides = [1, 1]} : vector<8x384xf32> to vector<8x128xf32>
    %122 = arith.addf %120, %121 : vector<8x128xf32>
    %123 = arith.negf %122 : vector<8x128xf32>
    %124 = math.exp %123 : vector<8x128xf32>
    %cst_46 = arith.constant 1.000000e+00 : f32
    %125 = vector.broadcast %cst_46 : f32 to vector<8x128xf32>
    %126 = arith.addf %125, %124 : vector<8x128xf32>
    %127 = arith.divf %125, %126 : vector<8x128xf32>
    %128 = vector.extract_strided_slice %112 {offsets = [0, 128], sizes = [8, 128], strides = [1, 1]} : vector<8x384xf32> to vector<8x128xf32>
    %129 = vector.extract_strided_slice %119 {offsets = [0, 128], sizes = [8, 128], strides = [1, 1]} : vector<8x384xf32> to vector<8x128xf32>
    %130 = arith.addf %128, %129 : vector<8x128xf32>
    %131 = arith.negf %130 : vector<8x128xf32>
    %132 = math.exp %131 : vector<8x128xf32>
    %cst_47 = arith.constant 1.000000e+00 : f32
    %133 = vector.broadcast %cst_47 : f32 to vector<8x128xf32>
    %134 = arith.addf %133, %132 : vector<8x128xf32>
    %135 = arith.divf %133, %134 : vector<8x128xf32>
    %136 = vector.extract_strided_slice %112 {offsets = [0, 256], sizes = [8, 128], strides = [1, 1]} : vector<8x384xf32> to vector<8x128xf32>
    %137 = vector.extract_strided_slice %119 {offsets = [0, 256], sizes = [8, 128], strides = [1, 1]} : vector<8x384xf32> to vector<8x128xf32>
    %138 = arith.mulf %127, %137 : vector<8x128xf32>
    %139 = arith.addf %136, %138 : vector<8x128xf32>
    %140 = math.tanh %139 : vector<8x128xf32>
    %cst_48 = arith.constant 1.000000e+00 : f32
    %141 = vector.broadcast %cst_48 : f32 to vector<8x128xf32>
    %142 = arith.subf %141, %135 : vector<8x128xf32>
    %143 = arith.mulf %142, %140 : vector<8x128xf32>
    %144 = arith.mulf %135, %58 : vector<8x128xf32>
    %145 = arith.addf %143, %144 : vector<8x128xf32>
    %146 = arith.addi %0, %c1_i32_36 : i32
    %147 = vector.broadcast %146 : i32 to vector<8x1xi32>
    %148 = arith.cmpi slt, %147, %3 : vector<8x1xi32>
    %cst_49 = arith.constant 0.000000e+00 : f32
    %149 = vector.shape_cast %148 : vector<8x1xi1> to vector<8x1xi1>
    %150 = vector.broadcast %149 : vector<8x1xi1> to vector<8x128xi1>
    %151 = vector.broadcast %cst_49 : f32 to vector<8x128xf32>
    %152 = arith.select %150, %145, %151 : vector<8x128xi1>, vector<8x128xf32>
    %153 = arith.index_cast %c1_i32_36 : i32 to index
    %c0_50 = arith.constant 0 : index
    %c0_51 = arith.constant 0 : index
    %154 = vector.load %arg7[%153, %c0_50, %c0_51] : memref<4x8x128xf32, #tpu.memory_space<vmem>>, vector<1x8x128xf32>
    %155 = vector.shape_cast %154 : vector<1x8x128xf32> to vector<8x128xf32>
    %156 = vector.shape_cast %152 : vector<8x128xf32> to vector<1x8x128xf32>
    tpu.vector_store %arg7[%153, %c0_50, %c0_51], %156 {strides = array<i32>} : memref<4x8x128xf32, #tpu.memory_space<vmem>>, vector<1x8x128xf32>,
    %157 = vector.shape_cast %148 : vector<8x1xi1> to vector<8x1xi1>
    %158 = vector.broadcast %157 : vector<8x1xi1> to vector<8x128xi1>
    %159 = arith.select %158, %145, %58 : vector<8x128xi1>, vector<8x128xf32>
    %c3_i32_52 = arith.constant 3 : i32
    %160 = arith.subi %c3_i32_52, %c1_i32_36 : i32
    %161 = arith.index_cast %160 : i32 to index
    %c0_53 = arith.constant 0 : index
    %c0_54 = arith.constant 0 : index
    %162 = vector.load %arg3[%161, %c0_53, %c0_54] : memref<4x8x384xf32, #tpu.memory_space<vmem>>, vector<1x8x384xf32>
    %163 = vector.shape_cast %162 : vector<1x8x384xf32> to vector<8x384xf32>
    %c1_55 = arith.constant 1 : index
    %c0_56 = arith.constant 0 : index
    %c0_57 = arith.constant 0 : index
    %164 = vector.load %arg5[%c1_55, %c0_56, %c0_57] : memref<2x128x384xf32, #tpu.memory_space<vmem>>, vector<1x128x384xf32>
    %165 = vector.shape_cast %164 : vector<1x128x384xf32> to vector<128x384xf32>
    %c1_58 = arith.constant 1 : index
    %c0_59 = arith.constant 0 : index
    %c0_60 = arith.constant 0 : index
    %166 = vector.load %arg6[%c1_58, %c0_59, %c0_60] : memref<2x1x384xf32, #tpu.memory_space<vmem>>, vector<1x1x384xf32>
    %167 = vector.shape_cast %166 : vector<1x1x384xf32> to vector<1x384xf32>
    %cst_61 = arith.constant dense<0.000000e+00> : vector<8x384xf32>
    %168 = tpu.matmul %109, %165, %cst_61 {dimension_numbers = #tpu.dot_dimension_numbers<[1], [0], [0], [1], [0, 0, 1, 1], [], []>} : vector<8x128xf32>, vector<128x384xf32>, vector<8x384xf32> -> vector<8x384xf32>
    %169 = vector.broadcast %167 : vector<1x384xf32> to vector<8x384xf32>
    %170 = arith.addf %168, %169 : vector<8x384xf32>
    %171 = vector.extract_strided_slice %163 {offsets = [0, 0], sizes = [8, 128], strides = [1, 1]} : vector<8x384xf32> to vector<8x128xf32>
    %172 = vector.extract_strided_slice %170 {offsets = [0, 0], sizes = [8, 128], strides = [1, 1]} : vector<8x384xf32> to vector<8x128xf32>
    %173 = arith.addf %171, %172 : vector<8x128xf32>
    %174 = arith.negf %173 : vector<8x128xf32>
    %175 = math.exp %174 : vector<8x128xf32>
    %cst_62 = arith.constant 1.000000e+00 : f32
    %176 = vector.broadcast %cst_62 : f32 to vector<8x128xf32>
    %177 = arith.addf %176, %175 : vector<8x128xf32>
    %178 = arith.divf %176, %177 : vector<8x128xf32>
    %179 = vector.extract_strided_slice %163 {offsets = [0, 128], sizes = [8, 128], strides = [1, 1]} : vector<8x384xf32> to vector<8x128xf32>
    %180 = vector.extract_strided_slice %170 {offsets = [0, 128], sizes = [8, 128], strides = [1, 1]} : vector<8x384xf32> to vector<8x128xf32>
    %181 = arith.addf %179, %180 : vector<8x128xf32>
    %182 = arith.negf %181 : vector<8x128xf32>
    %183 = math.exp %182 : vector<8x128xf32>
    %cst_63 = arith.constant 1.000000e+00 : f32
    %184 = vector.broadcast %cst_63 : f32 to vector<8x128xf32>
    %185 = arith.addf %184, %183 : vector<8x128xf32>
    %186 = arith.divf %184, %185 : vector<8x128xf32>
    %187 = vector.extract_strided_slice %163 {offsets = [0, 256], sizes = [8, 128], strides = [1, 1]} : vector<8x384xf32> to vector<8x128xf32>
    %188 = vector.extract_strided_slice %170 {offsets = [0, 256], sizes = [8, 128], strides = [1, 1]} : vector<8x384xf32> to vector<8x128xf32>
    %189 = arith.mulf %178, %188 : vector<8x128xf32>
    %190 = arith.addf %187, %189 : vector<8x128xf32>
    %191 = math.tanh %190 : vector<8x128xf32>
    %cst_64 = arith.constant 1.000000e+00 : f32
    %192 = vector.broadcast %cst_64 : f32 to vector<8x128xf32>
    %193 = arith.subf %192, %186 : vector<8x128xf32>
    %194 = arith.mulf %193, %191 : vector<8x128xf32>
    %195 = arith.mulf %186, %109 : vector<8x128xf32>
    %196 = arith.addf %194, %195 : vector<8x128xf32>
    %197 = arith.addi %2, %160 : i32
    %198 = vector.broadcast %197 : i32 to vector<8x1xi32>
    %199 = arith.cmpi slt, %198, %3 : vector<8x1xi32>
    %cst_65 = arith.constant 0.000000e+00 : f32
    %200 = vector.shape_cast %199 : vector<8x1xi1> to vector<8x1xi1>
    %201 = vector.broadcast %200 : vector<8x1xi1> to vector<8x128xi1>
    %202 = vector.broadcast %cst_65 : f32 to vector<8x128xf32>
    %203 = arith.select %201, %196, %202 : vector<8x128xi1>, vector<8x128xf32>
    %204 = arith.index_cast %160 : i32 to index
    %c0_66 = arith.constant 0 : index
    %c0_67 = arith.constant 0 : index
    %205 = vector.load %arg8[%204, %c0_66, %c0_67] : memref<4x8x128xf32, #tpu.memory_space<vmem>>, vector<1x8x128xf32>
    %206 = vector.shape_cast %205 : vector<1x8x128xf32> to vector<8x128xf32>
    %207 = vector.shape_cast %203 : vector<8x128xf32> to vector<1x8x128xf32>
    tpu.vector_store %arg8[%204, %c0_66, %c0_67], %207 {strides = array<i32>} : memref<4x8x128xf32, #tpu.memory_space<vmem>>, vector<1x8x128xf32>,
    %208 = vector.shape_cast %199 : vector<8x1xi1> to vector<8x1xi1>
    %209 = vector.broadcast %208 : vector<8x1xi1> to vector<8x128xi1>
    %210 = arith.select %209, %196, %109 : vector<8x128xi1>, vector<8x128xf32>
    %c2_i32 = arith.constant 2 : i32
    %211 = arith.index_cast %c2_i32 : i32 to index
    %c0_68 = arith.constant 0 : index
    %c0_69 = arith.constant 0 : index
    %212 = vector.load %arg2[%211, %c0_68, %c0_69] : memref<4x8x384xf32, #tpu.memory_space<vmem>>, vector<1x8x384xf32>
    %213 = vector.shape_cast %212 : vector<1x8x384xf32> to vector<8x384xf32>
    %c0_70 = arith.constant 0 : index
    %c0_71 = arith.constant 0 : index
    %c0_72 = arith.constant 0 : index
    %214 = vector.load %arg5[%c0_70, %c0_71, %c0_72] : memref<2x128x384xf32, #tpu.memory_space<vmem>>, vector<1x128x384xf32>
    %215 = vector.shape_cast %214 : vector<1x128x384xf32> to vector<128x384xf32>
    %c0_73 = arith.constant 0 : index
    %c0_74 = arith.constant 0 : index
    %c0_75 = arith.constant 0 : index
    %216 = vector.load %arg6[%c0_73, %c0_74, %c0_75] : memref<2x1x384xf32, #tpu.memory_space<vmem>>, vector<1x1x384xf32>
    %217 = vector.shape_cast %216 : vector<1x1x384xf32> to vector<1x384xf32>
    %cst_76 = arith.constant dense<0.000000e+00> : vector<8x384xf32>
    %218 = tpu.matmul %159, %215, %cst_76 {dimension_numbers = #tpu.dot_dimension_numbers<[1], [0], [0], [1], [0, 0, 1, 1], [], []>} : vector<8x128xf32>, vector<128x384xf32>, vector<8x384xf32> -> vector<8x384xf32>
    %219 = vector.broadcast %217 : vector<1x384xf32> to vector<8x384xf32>
    %220 = arith.addf %218, %219 : vector<8x384xf32>
    %221 = vector.extract_strided_slice %213 {offsets = [0, 0], sizes = [8, 128], strides = [1, 1]} : vector<8x384xf32> to vector<8x128xf32>
    %222 = vector.extract_strided_slice %220 {offsets = [0, 0], sizes = [8, 128], strides = [1, 1]} : vector<8x384xf32> to vector<8x128xf32>
    %223 = arith.addf %221, %222 : vector<8x128xf32>
    %224 = arith.negf %223 : vector<8x128xf32>
    %225 = math.exp %224 : vector<8x128xf32>
    %cst_77 = arith.constant 1.000000e+00 : f32
    %226 = vector.broadcast %cst_77 : f32 to vector<8x128xf32>
    %227 = arith.addf %226, %225 : vector<8x128xf32>
    %228 = arith.divf %226, %227 : vector<8x128xf32>
    %229 = vector.extract_strided_slice %213 {offsets = [0, 128], sizes = [8, 128], strides = [1, 1]} : vector<8x384xf32> to vector<8x128xf32>
    %230 = vector.extract_strided_slice %220 {offsets = [0, 128], sizes = [8, 128], strides = [1, 1]} : vector<8x384xf32> to vector<8x128xf32>
    %231 = arith.addf %229, %230 : vector<8x128xf32>
    %232 = arith.negf %231 : vector<8x128xf32>
    %233 = math.exp %232 : vector<8x128xf32>
    %cst_78 = arith.constant 1.000000e+00 : f32
    %234 = vector.broadcast %cst_78 : f32 to vector<8x128xf32>
    %235 = arith.addf %234, %233 : vector<8x128xf32>
    %236 = arith.divf %234, %235 : vector<8x128xf32>
    %237 = vector.extract_strided_slice %213 {offsets = [0, 256], sizes = [8, 128], strides = [1, 1]} : vector<8x384xf32> to vector<8x128xf32>
    %238 = vector.extract_strided_slice %220 {offsets = [0, 256], sizes = [8, 128], strides = [1, 1]} : vector<8x384xf32> to vector<8x128xf32>
    %239 = arith.mulf %228, %238 : vector<8x128xf32>
    %240 = arith.addf %237, %239 : vector<8x128xf32>
    %241 = math.tanh %240 : vector<8x128xf32>
    %cst_79 = arith.constant 1.000000e+00 : f32
    %242 = vector.broadcast %cst_79 : f32 to vector<8x128xf32>
    %243 = arith.subf %242, %236 : vector<8x128xf32>
    %244 = arith.mulf %243, %241 : vector<8x128xf32>
    %245 = arith.mulf %236, %159 : vector<8x128xf32>
    %246 = arith.addf %244, %245 : vector<8x128xf32>
    %247 = arith.addi %0, %c2_i32 : i32
    %248 = vector.broadcast %247 : i32 to vector<8x1xi32>
    %249 = arith.cmpi slt, %248, %3 : vector<8x1xi32>
    %cst_80 = arith.constant 0.000000e+00 : f32
    %250 = vector.shape_cast %249 : vector<8x1xi1> to vector<8x1xi1>
    %251 = vector.broadcast %250 : vector<8x1xi1> to vector<8x128xi1>
    %252 = vector.broadcast %cst_80 : f32 to vector<8x128xf32>
    %253 = arith.select %251, %246, %252 : vector<8x128xi1>, vector<8x128xf32>
    %254 = arith.index_cast %c2_i32 : i32 to index
    %c0_81 = arith.constant 0 : index
    %c0_82 = arith.constant 0 : index
    %255 = vector.load %arg7[%254, %c0_81, %c0_82] : memref<4x8x128xf32, #tpu.memory_space<vmem>>, vector<1x8x128xf32>
    %256 = vector.shape_cast %255 : vector<1x8x128xf32> to vector<8x128xf32>
    %257 = vector.shape_cast %253 : vector<8x128xf32> to vector<1x8x128xf32>
    tpu.vector_store %arg7[%254, %c0_81, %c0_82], %257 {strides = array<i32>} : memref<4x8x128xf32, #tpu.memory_space<vmem>>, vector<1x8x128xf32>,
    %258 = vector.shape_cast %249 : vector<8x1xi1> to vector<8x1xi1>
    %259 = vector.broadcast %258 : vector<8x1xi1> to vector<8x128xi1>
    %260 = arith.select %259, %246, %159 : vector<8x128xi1>, vector<8x128xf32>
    %c3_i32_83 = arith.constant 3 : i32
    %261 = arith.subi %c3_i32_83, %c2_i32 : i32
    %262 = arith.index_cast %261 : i32 to index
    %c0_84 = arith.constant 0 : index
    %c0_85 = arith.constant 0 : index
    %263 = vector.load %arg3[%262, %c0_84, %c0_85] : memref<4x8x384xf32, #tpu.memory_space<vmem>>, vector<1x8x384xf32>
    %264 = vector.shape_cast %263 : vector<1x8x384xf32> to vector<8x384xf32>
    %c1_86 = arith.constant 1 : index
    %c0_87 = arith.constant 0 : index
    %c0_88 = arith.constant 0 : index
    %265 = vector.load %arg5[%c1_86, %c0_87, %c0_88] : memref<2x128x384xf32, #tpu.memory_space<vmem>>, vector<1x128x384xf32>
    %266 = vector.shape_cast %265 : vector<1x128x384xf32> to vector<128x384xf32>
    %c1_89 = arith.constant 1 : index
    %c0_90 = arith.constant 0 : index
    %c0_91 = arith.constant 0 : index
    %267 = vector.load %arg6[%c1_89, %c0_90, %c0_91] : memref<2x1x384xf32, #tpu.memory_space<vmem>>, vector<1x1x384xf32>
    %268 = vector.shape_cast %267 : vector<1x1x384xf32> to vector<1x384xf32>
    %cst_92 = arith.constant dense<0.000000e+00> : vector<8x384xf32>
    %269 = tpu.matmul %210, %266, %cst_92 {dimension_numbers = #tpu.dot_dimension_numbers<[1], [0], [0], [1], [0, 0, 1, 1], [], []>} : vector<8x128xf32>, vector<128x384xf32>, vector<8x384xf32> -> vector<8x384xf32>
    %270 = vector.broadcast %268 : vector<1x384xf32> to vector<8x384xf32>
    %271 = arith.addf %269, %270 : vector<8x384xf32>
    %272 = vector.extract_strided_slice %264 {offsets = [0, 0], sizes = [8, 128], strides = [1, 1]} : vector<8x384xf32> to vector<8x128xf32>
    %273 = vector.extract_strided_slice %271 {offsets = [0, 0], sizes = [8, 128], strides = [1, 1]} : vector<8x384xf32> to vector<8x128xf32>
    %274 = arith.addf %272, %273 : vector<8x128xf32>
    %275 = arith.negf %274 : vector<8x128xf32>
    %276 = math.exp %275 : vector<8x128xf32>
    %cst_93 = arith.constant 1.000000e+00 : f32
    %277 = vector.broadcast %cst_93 : f32 to vector<8x128xf32>
    %278 = arith.addf %277, %276 : vector<8x128xf32>
    %279 = arith.divf %277, %278 : vector<8x128xf32>
    %280 = vector.extract_strided_slice %264 {offsets = [0, 128], sizes = [8, 128], strides = [1, 1]} : vector<8x384xf32> to vector<8x128xf32>
    %281 = vector.extract_strided_slice %271 {offsets = [0, 128], sizes = [8, 128], strides = [1, 1]} : vector<8x384xf32> to vector<8x128xf32>
    %282 = arith.addf %280, %281 : vector<8x128xf32>
    %283 = arith.negf %282 : vector<8x128xf32>
    %284 = math.exp %283 : vector<8x128xf32>
    %cst_94 = arith.constant 1.000000e+00 : f32
    %285 = vector.broadcast %cst_94 : f32 to vector<8x128xf32>
    %286 = arith.addf %285, %284 : vector<8x128xf32>
    %287 = arith.divf %285, %286 : vector<8x128xf32>
    %288 = vector.extract_strided_slice %264 {offsets = [0, 256], sizes = [8, 128], strides = [1, 1]} : vector<8x384xf32> to vector<8x128xf32>
    %289 = vector.extract_strided_slice %271 {offsets = [0, 256], sizes = [8, 128], strides = [1, 1]} : vector<8x384xf32> to vector<8x128xf32>
    %290 = arith.mulf %279, %289 : vector<8x128xf32>
    %291 = arith.addf %288, %290 : vector<8x128xf32>
    %292 = math.tanh %291 : vector<8x128xf32>
    %cst_95 = arith.constant 1.000000e+00 : f32
    %293 = vector.broadcast %cst_95 : f32 to vector<8x128xf32>
    %294 = arith.subf %293, %287 : vector<8x128xf32>
    %295 = arith.mulf %294, %292 : vector<8x128xf32>
    %296 = arith.mulf %287, %210 : vector<8x128xf32>
    %297 = arith.addf %295, %296 : vector<8x128xf32>
    %298 = arith.addi %2, %261 : i32
    %299 = vector.broadcast %298 : i32 to vector<8x1xi32>
    %300 = arith.cmpi slt, %299, %3 : vector<8x1xi32>
    %cst_96 = arith.constant 0.000000e+00 : f32
    %301 = vector.shape_cast %300 : vector<8x1xi1> to vector<8x1xi1>
    %302 = vector.broadcast %301 : vector<8x1xi1> to vector<8x128xi1>
    %303 = vector.broadcast %cst_96 : f32 to vector<8x128xf32>
    %304 = arith.select %302, %297, %303 : vector<8x128xi1>, vector<8x128xf32>
    %305 = arith.index_cast %261 : i32 to index
    %c0_97 = arith.constant 0 : index
    %c0_98 = arith.constant 0 : index
    %306 = vector.load %arg8[%305, %c0_97, %c0_98] : memref<4x8x128xf32, #tpu.memory_space<vmem>>, vector<1x8x128xf32>
    %307 = vector.shape_cast %306 : vector<1x8x128xf32> to vector<8x128xf32>
    %308 = vector.shape_cast %304 : vector<8x128xf32> to vector<1x8x128xf32>
    tpu.vector_store %arg8[%305, %c0_97, %c0_98], %308 {strides = array<i32>} : memref<4x8x128xf32, #tpu.memory_space<vmem>>, vector<1x8x128xf32>,
    %309 = vector.shape_cast %300 : vector<8x1xi1> to vector<8x1xi1>
    %310 = vector.broadcast %309 : vector<8x1xi1> to vector<8x128xi1>
    %311 = arith.select %310, %297, %210 : vector<8x128xi1>, vector<8x128xf32>
    %c3_i32_99 = arith.constant 3 : i32
    %312 = arith.index_cast %c3_i32_99 : i32 to index
    %c0_100 = arith.constant 0 : index
    %c0_101 = arith.constant 0 : index
    %313 = vector.load %arg2[%312, %c0_100, %c0_101] : memref<4x8x384xf32, #tpu.memory_space<vmem>>, vector<1x8x384xf32>
    %314 = vector.shape_cast %313 : vector<1x8x384xf32> to vector<8x384xf32>
    %c0_102 = arith.constant 0 : index
    %c0_103 = arith.constant 0 : index
    %c0_104 = arith.constant 0 : index
    %315 = vector.load %arg5[%c0_102, %c0_103, %c0_104] : memref<2x128x384xf32, #tpu.memory_space<vmem>>, vector<1x128x384xf32>
    %316 = vector.shape_cast %315 : vector<1x128x384xf32> to vector<128x384xf32>
    %c0_105 = arith.constant 0 : index
    %c0_106 = arith.constant 0 : index
    %c0_107 = arith.constant 0 : index
    %317 = vector.load %arg6[%c0_105, %c0_106, %c0_107] : memref<2x1x384xf32, #tpu.memory_space<vmem>>, vector<1x1x384xf32>
    %318 = vector.shape_cast %317 : vector<1x1x384xf32> to vector<1x384xf32>
    %cst_108 = arith.constant dense<0.000000e+00> : vector<8x384xf32>
    %319 = tpu.matmul %260, %316, %cst_108 {dimension_numbers = #tpu.dot_dimension_numbers<[1], [0], [0], [1], [0, 0, 1, 1], [], []>} : vector<8x128xf32>, vector<128x384xf32>, vector<8x384xf32> -> vector<8x384xf32>
    %320 = vector.broadcast %318 : vector<1x384xf32> to vector<8x384xf32>
    %321 = arith.addf %319, %320 : vector<8x384xf32>
    %322 = vector.extract_strided_slice %314 {offsets = [0, 0], sizes = [8, 128], strides = [1, 1]} : vector<8x384xf32> to vector<8x128xf32>
    %323 = vector.extract_strided_slice %321 {offsets = [0, 0], sizes = [8, 128], strides = [1, 1]} : vector<8x384xf32> to vector<8x128xf32>
    %324 = arith.addf %322, %323 : vector<8x128xf32>
    %325 = arith.negf %324 : vector<8x128xf32>
    %326 = math.exp %325 : vector<8x128xf32>
    %cst_109 = arith.constant 1.000000e+00 : f32
    %327 = vector.broadcast %cst_109 : f32 to vector<8x128xf32>
    %328 = arith.addf %327, %326 : vector<8x128xf32>
    %329 = arith.divf %327, %328 : vector<8x128xf32>
    %330 = vector.extract_strided_slice %314 {offsets = [0, 128], sizes = [8, 128], strides = [1, 1]} : vector<8x384xf32> to vector<8x128xf32>
    %331 = vector.extract_strided_slice %321 {offsets = [0, 128], sizes = [8, 128], strides = [1, 1]} : vector<8x384xf32> to vector<8x128xf32>
    %332 = arith.addf %330, %331 : vector<8x128xf32>
    %333 = arith.negf %332 : vector<8x128xf32>
    %334 = math.exp %333 : vector<8x128xf32>
    %cst_110 = arith.constant 1.000000e+00 : f32
    %335 = vector.broadcast %cst_110 : f32 to vector<8x128xf32>
    %336 = arith.addf %335, %334 : vector<8x128xf32>
    %337 = arith.divf %335, %336 : vector<8x128xf32>
    %338 = vector.extract_strided_slice %314 {offsets = [0, 256], sizes = [8, 128], strides = [1, 1]} : vector<8x384xf32> to vector<8x128xf32>
    %339 = vector.extract_strided_slice %321 {offsets = [0, 256], sizes = [8, 128], strides = [1, 1]} : vector<8x384xf32> to vector<8x128xf32>
    %340 = arith.mulf %329, %339 : vector<8x128xf32>
    %341 = arith.addf %338, %340 : vector<8x128xf32>
    %342 = math.tanh %341 : vector<8x128xf32>
    %cst_111 = arith.constant 1.000000e+00 : f32
    %343 = vector.broadcast %cst_111 : f32 to vector<8x128xf32>
    %344 = arith.subf %343, %337 : vector<8x128xf32>
    %345 = arith.mulf %344, %342 : vector<8x128xf32>
    %346 = arith.mulf %337, %260 : vector<8x128xf32>
    %347 = arith.addf %345, %346 : vector<8x128xf32>
    %348 = arith.addi %0, %c3_i32_99 : i32
    %349 = vector.broadcast %348 : i32 to vector<8x1xi32>
    %350 = arith.cmpi slt, %349, %3 : vector<8x1xi32>
    %cst_112 = arith.constant 0.000000e+00 : f32
    %351 = vector.shape_cast %350 : vector<8x1xi1> to vector<8x1xi1>
    %352 = vector.broadcast %351 : vector<8x1xi1> to vector<8x128xi1>
    %353 = vector.broadcast %cst_112 : f32 to vector<8x128xf32>
    %354 = arith.select %352, %347, %353 : vector<8x128xi1>, vector<8x128xf32>
    %355 = arith.index_cast %c3_i32_99 : i32 to index
    %c0_113 = arith.constant 0 : index
    %c0_114 = arith.constant 0 : index
    %356 = vector.load %arg7[%355, %c0_113, %c0_114] : memref<4x8x128xf32, #tpu.memory_space<vmem>>, vector<1x8x128xf32>
    %357 = vector.shape_cast %356 : vector<1x8x128xf32> to vector<8x128xf32>
    %358 = vector.shape_cast %354 : vector<8x128xf32> to vector<1x8x128xf32>
    tpu.vector_store %arg7[%355, %c0_113, %c0_114], %358 {strides = array<i32>} : memref<4x8x128xf32, #tpu.memory_space<vmem>>, vector<1x8x128xf32>,
    %359 = vector.shape_cast %350 : vector<8x1xi1> to vector<8x1xi1>
    %360 = vector.broadcast %359 : vector<8x1xi1> to vector<8x128xi1>
    %361 = arith.select %360, %347, %260 : vector<8x128xi1>, vector<8x128xf32>
    %c3_i32_115 = arith.constant 3 : i32
    %362 = arith.subi %c3_i32_115, %c3_i32_99 : i32
    %363 = arith.index_cast %362 : i32 to index
    %c0_116 = arith.constant 0 : index
    %c0_117 = arith.constant 0 : index
    %364 = vector.load %arg3[%363, %c0_116, %c0_117] : memref<4x8x384xf32, #tpu.memory_space<vmem>>, vector<1x8x384xf32>
    %365 = vector.shape_cast %364 : vector<1x8x384xf32> to vector<8x384xf32>
    %c1_118 = arith.constant 1 : index
    %c0_119 = arith.constant 0 : index
    %c0_120 = arith.constant 0 : index
    %366 = vector.load %arg5[%c1_118, %c0_119, %c0_120] : memref<2x128x384xf32, #tpu.memory_space<vmem>>, vector<1x128x384xf32>
    %367 = vector.shape_cast %366 : vector<1x128x384xf32> to vector<128x384xf32>
    %c1_121 = arith.constant 1 : index
    %c0_122 = arith.constant 0 : index
    %c0_123 = arith.constant 0 : index
    %368 = vector.load %arg6[%c1_121, %c0_122, %c0_123] : memref<2x1x384xf32, #tpu.memory_space<vmem>>, vector<1x1x384xf32>
    %369 = vector.shape_cast %368 : vector<1x1x384xf32> to vector<1x384xf32>
    %cst_124 = arith.constant dense<0.000000e+00> : vector<8x384xf32>
    %370 = tpu.matmul %311, %367, %cst_124 {dimension_numbers = #tpu.dot_dimension_numbers<[1], [0], [0], [1], [0, 0, 1, 1], [], []>} : vector<8x128xf32>, vector<128x384xf32>, vector<8x384xf32> -> vector<8x384xf32>
    %371 = vector.broadcast %369 : vector<1x384xf32> to vector<8x384xf32>
    %372 = arith.addf %370, %371 : vector<8x384xf32>
    %373 = vector.extract_strided_slice %365 {offsets = [0, 0], sizes = [8, 128], strides = [1, 1]} : vector<8x384xf32> to vector<8x128xf32>
    %374 = vector.extract_strided_slice %372 {offsets = [0, 0], sizes = [8, 128], strides = [1, 1]} : vector<8x384xf32> to vector<8x128xf32>
    %375 = arith.addf %373, %374 : vector<8x128xf32>
    %376 = arith.negf %375 : vector<8x128xf32>
    %377 = math.exp %376 : vector<8x128xf32>
    %cst_125 = arith.constant 1.000000e+00 : f32
    %378 = vector.broadcast %cst_125 : f32 to vector<8x128xf32>
    %379 = arith.addf %378, %377 : vector<8x128xf32>
    %380 = arith.divf %378, %379 : vector<8x128xf32>
    %381 = vector.extract_strided_slice %365 {offsets = [0, 128], sizes = [8, 128], strides = [1, 1]} : vector<8x384xf32> to vector<8x128xf32>
    %382 = vector.extract_strided_slice %372 {offsets = [0, 128], sizes = [8, 128], strides = [1, 1]} : vector<8x384xf32> to vector<8x128xf32>
    %383 = arith.addf %381, %382 : vector<8x128xf32>
    %384 = arith.negf %383 : vector<8x128xf32>
    %385 = math.exp %384 : vector<8x128xf32>
    %cst_126 = arith.constant 1.000000e+00 : f32
    %386 = vector.broadcast %cst_126 : f32 to vector<8x128xf32>
    %387 = arith.addf %386, %385 : vector<8x128xf32>
    %388 = arith.divf %386, %387 : vector<8x128xf32>
    %389 = vector.extract_strided_slice %365 {offsets = [0, 256], sizes = [8, 128], strides = [1, 1]} : vector<8x384xf32> to vector<8x128xf32>
    %390 = vector.extract_strided_slice %372 {offsets = [0, 256], sizes = [8, 128], strides = [1, 1]} : vector<8x384xf32> to vector<8x128xf32>
    %391 = arith.mulf %380, %390 : vector<8x128xf32>
    %392 = arith.addf %389, %391 : vector<8x128xf32>
    %393 = math.tanh %392 : vector<8x128xf32>
    %cst_127 = arith.constant 1.000000e+00 : f32
    %394 = vector.broadcast %cst_127 : f32 to vector<8x128xf32>
    %395 = arith.subf %394, %388 : vector<8x128xf32>
    %396 = arith.mulf %395, %393 : vector<8x128xf32>
    %397 = arith.mulf %388, %311 : vector<8x128xf32>
    %398 = arith.addf %396, %397 : vector<8x128xf32>
    %399 = arith.addi %2, %362 : i32
    %400 = vector.broadcast %399 : i32 to vector<8x1xi32>
    %401 = arith.cmpi slt, %400, %3 : vector<8x1xi32>
    %cst_128 = arith.constant 0.000000e+00 : f32
    %402 = vector.shape_cast %401 : vector<8x1xi1> to vector<8x1xi1>
    %403 = vector.broadcast %402 : vector<8x1xi1> to vector<8x128xi1>
    %404 = vector.broadcast %cst_128 : f32 to vector<8x128xf32>
    %405 = arith.select %403, %398, %404 : vector<8x128xi1>, vector<8x128xf32>
    %406 = arith.index_cast %362 : i32 to index
    %c0_129 = arith.constant 0 : index
    %c0_130 = arith.constant 0 : index
    %407 = vector.load %arg8[%406, %c0_129, %c0_130] : memref<4x8x128xf32, #tpu.memory_space<vmem>>, vector<1x8x128xf32>
    %408 = vector.shape_cast %407 : vector<1x8x128xf32> to vector<8x128xf32>
    %409 = vector.shape_cast %405 : vector<8x128xf32> to vector<1x8x128xf32>
    tpu.vector_store %arg8[%406, %c0_129, %c0_130], %409 {strides = array<i32>} : memref<4x8x128xf32, #tpu.memory_space<vmem>>, vector<1x8x128xf32>,
    %410 = vector.shape_cast %401 : vector<8x1xi1> to vector<8x1xi1>
    %411 = vector.broadcast %410 : vector<8x1xi1> to vector<8x128xi1>
    %412 = arith.select %411, %398, %311 : vector<8x128xi1>, vector<8x128xf32>
    %c4_i32_131 = arith.constant 4 : i32
    %c0_132 = arith.constant 0 : index
    %c0_133 = arith.constant 0 : index
    %413 = vector.load %arg10[%c0_132, %c0_133] : memref<8x128xf32, #tpu.memory_space<vmem>>, vector<8x128xf32>
    tpu.vector_store %arg10[%c0_132, %c0_133], %361 {strides = array<i32>} : memref<8x128xf32, #tpu.memory_space<vmem>>, vector<8x128xf32>,
    %c0_134 = arith.constant 0 : index
    %c0_135 = arith.constant 0 : index
    %414 = vector.load %arg11[%c0_134, %c0_135] : memref<8x128xf32, #tpu.memory_space<vmem>>, vector<8x128xf32>
    tpu.vector_store %arg11[%c0_134, %c0_135], %412 {strides = array<i32>} : memref<8x128xf32, #tpu.memory_space<vmem>>, vector<8x128xf32>,
    %c1_i32_136 = arith.constant 1 : i32
    %415 = arith.cmpi eq, %arg0, %c1_i32_136 : i32
    %416 = arith.extui %415 : i1 to i32
    %c0_i32_137 = arith.constant 0 : i32
    %417 = arith.cmpi ne, %416, %c0_i32_137 : i32
    scf.if %417 {
      %c0_138 = arith.constant 0 : index
      %c0_139 = arith.constant 0 : index
      %c0_140 = arith.constant 0 : index
      %418 = vector.load %arg9[%c0_138, %c0_139, %c0_140] : memref<2x8x128xf32, #tpu.memory_space<vmem>>, vector<1x8x128xf32>
      %419 = vector.shape_cast %418 : vector<1x8x128xf32> to vector<8x128xf32>
      %420 = vector.shape_cast %361 : vector<8x128xf32> to vector<1x8x128xf32>
      tpu.vector_store %arg9[%c0_138, %c0_139, %c0_140], %420 {strides = array<i32>} : memref<2x8x128xf32, #tpu.memory_space<vmem>>, vector<1x8x128xf32>,
      %c1_141 = arith.constant 1 : index
      %c0_142 = arith.constant 0 : index
      %c0_143 = arith.constant 0 : index
      %421 = vector.load %arg9[%c1_141, %c0_142, %c0_143] : memref<2x8x128xf32, #tpu.memory_space<vmem>>, vector<1x8x128xf32>
      %422 = vector.shape_cast %421 : vector<1x8x128xf32> to vector<8x128xf32>
      %423 = vector.shape_cast %412 : vector<8x128xf32> to vector<1x8x128xf32>
      tpu.vector_store %arg9[%c1_141, %c0_142, %c0_143], %423 {strides = array<i32>} : memref<2x8x128xf32, #tpu.memory_space<vmem>>, vector<1x8x128xf32>,
    } else {
    }
    return
  }
  func.func @transform_0(%arg0: i32) -> (i32, i32) {
    %c0_i32 = arith.constant 0 : i32
    %c0_i32_0 = arith.constant 0 : i32
    %c0_i32_1 = arith.constant 0 : i32
    return %c0_i32, %c0_i32_0 : i32, i32
  }
  func.func @transform_1(%arg0: i32) -> (i32, i32, i32) {
    %c0_i32 = arith.constant 0 : i32
    %c0_i32_0 = arith.constant 0 : i32
    %c0_i32_1 = arith.constant 0 : i32
    return %arg0, %c0_i32, %c0_i32_0 : i32, i32, i32
  }
  func.func @transform_2(%arg0: i32) -> (i32, i32, i32) {
    %c1_i32 = arith.constant 1 : i32
    %0 = arith.subi %c1_i32, %arg0 : i32
    %c0_i32 = arith.constant 0 : i32
    %c0_i32_0 = arith.constant 0 : i32
    %c0_i32_1 = arith.constant 0 : i32
    return %0, %c0_i32, %c0_i32_0 : i32, i32, i32
  }
  func.func @transform_3(%arg0: i32) -> (i32, i32, i32) {
    %c0_i32 = arith.constant 0 : i32
    %c0_i32_0 = arith.constant 0 : i32
    %c0_i32_1 = arith.constant 0 : i32
    %c0_i32_2 = arith.constant 0 : i32
    return %c0_i32, %c0_i32_0, %c0_i32_1 : i32, i32, i32
  }
  func.func @transform_4(%arg0: i32) -> (i32, i32, i32) {
    %c0_i32 = arith.constant 0 : i32
    %c0_i32_0 = arith.constant 0 : i32
    %c0_i32_1 = arith.constant 0 : i32
    %c0_i32_2 = arith.constant 0 : i32
    return %c0_i32, %c0_i32_0, %c0_i32_1 : i32, i32, i32
  }
  func.func @transform_5(%arg0: i32) -> (i32, i32, i32) {
    %c0_i32 = arith.constant 0 : i32
    %c0_i32_0 = arith.constant 0 : i32
    %c0_i32_1 = arith.constant 0 : i32
    %c0_i32_2 = arith.constant 0 : i32
    return %c0_i32, %c0_i32_0, %c0_i32_1 : i32, i32, i32
  }
  func.func @transform_6(%arg0: i32) -> (i32, i32, i32) {
    %c0_i32 = arith.constant 0 : i32
    %c0_i32_0 = arith.constant 0 : i32
    %c0_i32_1 = arith.constant 0 : i32
    return %arg0, %c0_i32, %c0_i32_0 : i32, i32, i32
  }
  func.func @transform_7(%arg0: i32) -> (i32, i32, i32) {
    %c1_i32 = arith.constant 1 : i32
    %0 = arith.subi %c1_i32, %arg0 : i32
    %c0_i32 = arith.constant 0 : i32
    %c0_i32_0 = arith.constant 0 : i32
    %c0_i32_1 = arith.constant 0 : i32
    return %0, %c0_i32, %c0_i32_0 : i32, i32, i32
  }
  func.func @transform_8(%arg0: i32) -> (i32, i32, i32) {
    %c0_i32 = arith.constant 0 : i32
    %c0_i32_0 = arith.constant 0 : i32
    %c0_i32_1 = arith.constant 0 : i32
    %c0_i32_2 = arith.constant 0 : i32
    return %c0_i32, %c0_i32_0, %c0_i32_1 : i32, i32, i32
  }
}

</mosaic_0001>

<bundles_post_ra>
// kernel: encoder_rnn_forward.1
= control target key start
LH: loop header
LB: loop body
LE: loop exit
PB: predicated region body
PF: predicated region fallthrough
CT: control target
= control target key end

     0   :  { %s3259_s27 = smov 0   ;;  %s4985_s0 = inlined_call_operand.vmem [shape: s32[8,1], index: 0, kind: input, shape index: {}]   ;;  %s4986_s1 = inlined_call_operand.vmem [shape: f32[8,8,384], index: 1, kind: input, shape index: {}]   ;;  %s4987_s2 = inlined_call_operand.vmem [shape: f32[8,8,384], index: 2, kind: input, shape index: {}]   ;;  %s4988_s3 = inlined_call_operand.vmem [shape: f32[2,8,128], index: 3, kind: input, shape index: {}]   ;;  %s4989_s4 = inlined_call_operand.vmem [shape: f32[2,128,384], index: 4, kind: input, shape index: {}]   ;;  %s4990_s5 = inlined_call_operand.vmem [shape: f32[2,1,384], index: 5, kind: input, shape index: {}]   ;;  %s4991_s6 = inlined_call_operand.vmem [shape: f32[8,8,128], index: 6, kind: output, shape index: {0}]   ;;  %s4992_s7 = inlined_call_operand.vmem [shape: f32[8,8,128], index: 7, kind: output, shape index: {1}]   ;;  %s4993_s8 = inlined_call_operand.vmem [shape: f32[2,8,128], index: 8, kind: output, shape index: {2}]  }
   0x1 LB: > { %s3265_s28 = sadd.s32 4294967295, %s3209_s27   ;;  %p2439_p0 = scmp.ge.s32.totalorder %s3209_s27, 1  ;;  %s3209_s27 = sphi %s3259_s27, %s19_s27  }
   0x2   : > { %p282_p1 = scmp.lt.s32.totalorder %s3209_s27, 3 }
   0x4   : > { %p283_p2 = pnand %p2439_p0, %p282_p1 }
   0x6   : > { %286 = sbr.rel (%p283_p2) target bundleno = 1103 (0x44f), region = 44 }
   0xb   : > { %s3270_s29 = sshll.u32 %s3265_s28, 2  ;;  %s337_s30 = ssub.s32 1, %s3265_s28  ;;  %v3276_v0 = vld [vmem:[%s4985_s0] sm:$0xff] }
   0xc   : > { %p331_p3 = scmp.lt.s32.totalorder %s3270_s29, 7  ;;  %s3279_s11 = sshll.u32 %s337_s30, 2 }
   0xd   : > { %p339_p4 = scmp.lt.s32.totalorder %s3279_s11, 7  ;;  %p2450_p5 = scmp.ne.s32.totalorder %s3265_s28, 0 }
   0xe   : > { %s332_s12 = scalar_select %p331_p3, %s3270_s29, 7 }
   0xf   : > { %s340_s13 = scalar_select %p339_p4, %s3279_s11, 7 }
  0x10   : > { %s3108_s14 = smul.u32 24, %s332_s12  ;;  %s2445_s15 = sshll.u32 %s332_s12, 3 }
  0x11   : > { %s3109_s16 = smul.u32 24, %s340_s13  ;;  %s3287_s19 = scalar_lea.vmem %s4991_s6, %s2445_s15 }
  0x12   : > { %s3292_s22 = scalar_lea.vmem %s4986_s1, %s3108_s14  ;;  %s2447_s23 = sshll.u32 %s340_s13, 3 }
  0x13   : > { %s3297_s26 = scalar_lea.vmem %s4987_s2, %s3109_s16  ;;  %s3302_s10 = scalar_lea.vmem %s4992_s7, %s2447_s23 }
  0x14   : > { %367 = sbr.rel (%p2450_p5) target bundleno = 27 (0x1b), region = 48 }
  0x19   : > { %v368_v1 = vld [vmem:[%s4988_s3] sm:$0xff]  ;;  %v2451_v2 = vld [vmem:[%s4988_s3 + $0x8] sm:$0xff] }
  0x1a   : > { %369 = vst [vmem:[#allocation2] sm:$0xff] %v368_v1  ;;  %372 = vst [vmem:[#allocation3] sm:$0xff] %v2451_v2 }
  0x1b PF: > { %v3314_v3 = vld [vmem:[%s4989_s4 + $0x170] sm:$0xff]  ;;  %v3319_v4 = vld [vmem:[%s4989_s4 + $0x168] sm:$0xff]  ;;  %v3324_v5 = vld [vmem:[%s4989_s4 + $0x158] sm:$0xff]  ;;  %v605_v6 = vstv %s3270_s29  ;;  %v5002_v8 = vmov 0.0   ;;  %s848_s30 = sadd.s32 3, %s3279_s11  ;;  %v4994_v10 = vmov 0  }
  0x1c   : > { %443 = vmatprep.subr.mxu0 %v3314_v3  ;;  %v3331_v7 = vld [vmem:[%s4989_s4 + $0x150] sm:$0xff]  ;;  %507 = vmatprep.mubr.f32.mxu0 %v5002_v8  ;;  %vm606_vm0 = vcmp.lt.s32.totalorder %v605_v6, %v3276_v0  ;;  %v3340_v9 = vld [vmem:[%s4989_s4 + $0x140] sm:$0xff]  ;;  %v849_v12 = vstv %s848_s30  ;;  %v3348_v13 = vld [vmem:[%s4989_s4 + $0x138] sm:$0xff]  ;;  %vm3213_vm1 = vmmov 0   ;;  %s1577_s25 = sadd.s32 2, %s3270_s29  ;;  %s2063_s24 = sadd.s32 3, %s3270_s29 }
  0x1d   : > { %444 = vmatpush1.msra.mxu0 %v3319_v4  ;;  %2828 = vmatprep.subr.mxu1 %v5002_v8  ;;  %v607_v11 = vsel %vm606_vm0, 1, %v4994_v10  ;;  %vm850_vm2 = vcmp.lt.s32.totalorder %v849_v12, %v3276_v0  ;;  %v3357_v14 = vld [vmem:[%s4989_s4 + $0x128] sm:$0xff]  ;;  %v3364_v15 = vld [vmem:[%s4989_s4 + $0x120] sm:$0xff]  ;;  %v3370_v16 = vld [vmem:[%s4989_s4 + $0x110] sm:$0xff]  ;;  %s1091_s17 = sadd.s32 1, %s3270_s29  ;;  %s1334_s13 = sadd.s32 2, %s3279_s11 }
  0x1e   : > { %445 = vmatprep.subr.mxu0 %v3324_v5  ;;  %2860 = vmatprep.mubr.msk.f32.mxu1 %vm3213_vm1, %v5002_v8  ;;  %v851_v17 = vsel %vm850_vm2, 1, %v4994_v10  ;;  %v3378_v18 = vld [vmem:[%s4989_s4 + $0x108] sm:$0xff]  ;;  %v3384_v19 = vld [vmem:[%s4989_s4 + $0xf8] sm:$0xff]  ;;  %v3390_v20 = vld [vmem:[%s4989_s4 + $0xf0] sm:$0xff]  ;;  %s1820_s16 = sadd.s32 1, %s3279_s11  ;;  %p2688_p6 = scmp.ne.s32.totalorder %s3265_s28, 1 }
  0x1f   : > { %446 = vmatpush1.msra.mxu0 %v3331_v7  ;;  %3121 = vset.pattern.permute.xlu0 %v4994_v10  ;;  %v3396_v21 = vld [vmem:[%s4989_s4 + $0xe0] sm:$0xff]  ;;  %v3402_v22 = vld [vmem:[%s4989_s4 + $0xd8] sm:$0xff]  ;;  %v3413_v24 = vld [vmem:[%s4989_s4 + $0xc8] sm:$0xff] }
  0x20   : > { %447 = vmatprep.subr.mxu0 %v3340_v9  ;;  %609 = vperm.xlu0 %3121, %v607_v11   ;;  %v3407_v23 = vld [vmem:[%s4989_s4 + $0x178] sm:$0xff]  ;;  %v3419_v25 = vld [vmem:[%s4989_s4 + $0x160] sm:$0xff]  ;;  %v3431_v27 = vld [vmem:[%s4989_s4 + $0x148] sm:$0xff] }
  0x21   : > { %448 = vmatpush1.msra.mxu0 %v3348_v13  ;;  %3122 = vset.pattern.permute.xlu1 %v4994_v10  ;;  %v3425_v26 = vld [vmem:[%s4989_s4 + $0xc0] sm:$0xff]  ;;  %v3437_v28 = vld [vmem:[%s4989_s4 + $0xb0] sm:$0xff]  ;;  %v3444_v29 = vld [vmem:[%s4989_s4 + $0xa8] sm:$0xff] }
  0x22   : > { %449 = vmatprep.subr.mxu0 %v3357_v14  ;;  %2829 = vmatpush3.msra.mxu1 %v3407_v23  ;;  %v3450_v30 = vld [vmem:[%s4989_s4 + $0x130] sm:$0xff]  ;;  %v3456_v31 = vld [vmem:[%s4989_s4 + $0x98] sm:$0xff]  ;;  %v3475_v34 = vld [vmem:[%s4989_s4 + $0x80] sm:$0xff] }
  0x23   : > { %450 = vmatpush1.msra.mxu0 %v3364_v15  ;;  %2830 = vmatprep.subr.mxu1 %v5002_v8  ;;  %v3463_v32 = vld [vmem:[%s4989_s4 + $0x90] sm:$0xff]  ;;  %v3469_v33 = vld [vmem:[%s4989_s4 + $0x118] sm:$0xff]  ;;  %v3488_v36 = vld [vmem:[%s4989_s4 + $0x100] sm:$0xff] }
  0x24   : > { %451 = vmatprep.subr.mxu0 %v3370_v16  ;;  %853 = vperm.xlu0 %3121, %v851_v17   ;;  %v3482_v35 = vld [vmem:[%s4989_s4 + $0x78] sm:$0xff]  ;;  %v3494_v37 = vld [vmem:[%s4989_s4 + $0x68] sm:$0xff]  ;;  %v3501_v38 = vld [vmem:[%s4989_s4 + $0x60] sm:$0xff] }
  0x25   : > { %452 = vmatpush1.msra.mxu0 %v3378_v18  ;;  %2831 = vmatpush3.msra.mxu1 %v3419_v25  ;;  %v3507_v39 = vld [vmem:[%s4989_s4 + $0xe8] sm:$0xff]  ;;  %v3513_v40 = vld [vmem:[%s4989_s4 + $0x50] sm:$0xff]  ;;  %v3532_v43 = vld [vmem:[%s4989_s4 + $0x38] sm:$0xff] }
  0x26   : > { %453 = vmatprep.subr.mxu0 %v3384_v19  ;;  %2832 = vmatprep.subr.mxu1 %v5002_v8  ;;  %v3520_v41 = vld [vmem:[%s4989_s4 + $0x48] sm:$0xff]  ;;  %v3526_v42 = vld [vmem:[%s4989_s4 + $0xd0] sm:$0xff]  ;;  %v3545_v45 = vld [vmem:[%s4989_s4 + $0xb8] sm:$0xff] }
  0x27   : > { %454 = vmatpush1.msra.mxu0 %v3390_v20  ;;  %2833 = vmatpush3.msra.mxu1 %v3431_v27  ;;  %v3539_v44 = vld [vmem:[%s4989_s4 + $0x30] sm:$0xff]  ;;  %v3551_v46 = vld [vmem:[%s4989_s4 + $0x20] sm:$0xff]  ;;  %v3558_v47 = vld [vmem:[%s4989_s4 + $0x18] sm:$0xff] }
  0x28   : > { %455 = vmatprep.subr.mxu0 %v3396_v21  ;;  %2834 = vmatprep.subr.mxu1 %v5002_v8  ;;  %v3564_v48 = vld [vmem:[%s4989_s4 + $0xa0] sm:$0xff]  ;;  %v3570_v49 = vld [vmem:[%s4989_s4 + $0x8] sm:$0xff]  ;;  %v3591_v53 = vld [vmem:[%s4989_s4 + $0x2f0] sm:$0xff] }
  0x29   : > { %456 = vmatpush1.msra.mxu0 %v3402_v22  ;;  %2835 = vmatpush3.msra.mxu1 %v3450_v30  ;;  %v3577_v50 = vld [vmem:[%s4989_s4] sm:$0xff]  ;;  %v3583_v51 = vld [vmem:[%s4989_s4 + $0x88] sm:$0xff]  ;;  %v3605_v55 = vld [vmem:[%s4989_s4 + $0x2d8] sm:$0xff] }
  0x2a   : > { %457 = vmatprep.subr.mxu0 %v3413_v24  ;;  %2836 = vmatprep.subr.mxu1 %v5002_v8  ;;  %v3586_v52 = vld [vmem:[#allocation2] sm:$0xff]  ;;  %v3598_v54 = vld [vmem:[%s4989_s4 + $0x2e8] sm:$0xff]  ;;  %v3611_v56 = vld [vmem:[%s4989_s4 + $0x70] sm:$0xff] }
  0x2b   : > { %458 = vmatpush1.msra.mxu0 %v3425_v26  ;;  %2837 = vmatpush3.msra.mxu1 %v3469_v33  ;;  %v3618_v57 = vld [vmem:[%s4989_s4 + $0x2d0] sm:$0xff]  ;;  %v3624_v58 = vld [vmem:[%s4989_s4 + $0x2c0] sm:$0xff]  ;;  %v3630_v59 = vld [vmem:[%s4989_s4 + $0x58] sm:$0xff] }
  0x2c   : > { %459 = vmatprep.subr.mxu0 %v3437_v28  ;;  %2838 = vmatprep.subr.mxu1 %v5002_v8  ;;  %5080 = vst [vmem:[#allocation4_spill] sm:$0xff] %v3618_v57  ;;  %5081 = vst [vmem:[#allocation5_spill] sm:$0xff] %v3624_v58  ;;  %v3636_v60 = vld [vmem:[%s4989_s4 + $0x2b8] sm:$0xff]  ;;  %v3643_v61 = vld [vmem:[%s4989_s4 + $0x2a8] sm:$0xff] }
  0x2d   : > { %460 = vmatpush1.msra.mxu0 %v3444_v29  ;;  %2839 = vmatpush3.msra.mxu1 %v3488_v36  ;;  %5082 = vst [vmem:[#allocation6_spill] sm:$0xff] %v3636_v60  ;;  %5083 = vst [vmem:[#allocation7_spill] sm:$0xff] %v3643_v61  ;;  %v3649_v62 = vld [vmem:[%s4989_s4 + $0x40] sm:$0xff]  ;;  %v3662_v1 = vld [vmem:[%s4989_s4 + $0x290] sm:$0xff] }
  0x2e   : > { %461 = vmatprep.subr.mxu0 %v3456_v31  ;;  %2840 = vmatprep.subr.mxu1 %v5002_v8  ;;  %v3655_v63 = vld [vmem:[%s4989_s4 + $0x2a0] sm:$0xff]  ;;  %5085 = vst [vmem:[#allocation9_spill] sm:$0xff] %v3662_v1  ;;  %v3668_v2 = vld [vmem:[%s4989_s4 + $0x28] sm:$0xff]  ;;  %v3681_v11 = vld [vmem:[%s4989_s4 + $0x278] sm:$0xff] }
  0x2f   : > { %462 = vmatpush1.msra.mxu0 %v3463_v32  ;;  %2841 = vmatpush3.msra.mxu1 %v3507_v39  ;;  %5084 = vst [vmem:[#allocation8_spill] sm:$0xff] %v3655_v63  ;;  %v3674_v6 = vld [vmem:[%s4989_s4 + $0x288] sm:$0xff]  ;;  %5087 = vst [vmem:[#allocation11_spill] sm:$0xff] %v3681_v11  ;;  %v3687_v12 = vld [vmem:[%s4989_s4 + $0x10] sm:$0xff] }
  0x30   : > { %463 = vmatprep.subr.mxu0 %v3475_v34  ;;  %2842 = vmatprep.subr.mxu1 %v5002_v8  ;;  %5086 = vst [vmem:[#allocation10_spill] sm:$0xff] %v3674_v6  ;;  %v3693_v17 = vld [vmem:[%s4989_s4 + $0x270] sm:$0xff]  ;;  %v3700_v10 = vld [vmem:[%s4989_s4 + $0x260] sm:$0xff] }
  0x31   : > { %464 = vmatpush1.msra.mxu0 %v3482_v35  ;;  %2843 = vmatpush3.msra.mxu1 %v3526_v42  ;;  %5088 = vst [vmem:[#allocation12_spill] sm:$0xff] %v3693_v17  ;;  %5089 = vst [vmem:[#allocation13_spill] sm:$0xff] %v3700_v10 }
  0x32   : > { %465 = vmatprep.subr.mxu0 %v3494_v37  ;;  %2844 = vmatprep.subr.mxu1 %v5002_v8 }
  0x33   : > { %466 = vmatpush1.msra.mxu0 %v3501_v38  ;;  %2845 = vmatpush3.msra.mxu1 %v3545_v45 }
  0x34   : > { %467 = vmatprep.subr.mxu0 %v3513_v40  ;;  %2846 = vmatprep.subr.mxu1 %v5002_v8 }
  0x35   : > { %468 = vmatpush1.msra.mxu0 %v3520_v41  ;;  %2847 = vmatpush3.msra.mxu1 %v3564_v48 }
  0x36   : > { %469 = vmatprep.subr.mxu0 %v3532_v43  ;;  %2848 = vmatprep.subr.mxu1 %v5002_v8 }
  0x37   : > { %470 = vmatpush1.msra.mxu0 %v3539_v44  ;;  %2849 = vmatpush3.msra.mxu1 %v3583_v51 }
  0x38   : > { %471 = vmatprep.subr.mxu0 %v3551_v46  ;;  %2850 = vmatprep.subr.mxu1 %v5002_v8 }
  0x39   : > { %472 = vmatpush1.msra.mxu0 %v3558_v47  ;;  %2851 = vmatpush3.msra.mxu1 %v3611_v56 }
  0x3a   : > { %473 = vmatprep.subr.mxu0 %v3570_v49  ;;  %2852 = vmatprep.subr.mxu1 %v5002_v8 }
  0x3b   : > { %474 = vmatpush1.msra.mxu0 %v3577_v50  ;;  %2853 = vmatpush3.msra.mxu1 %v3630_v59 }
  0x3c   : > { %508 = vmatmul.mubr.f32.vlgmr.msra.gmra.mxu0 %v3586_v52  ;;  %686 = vmatprep.subr.mxu0 %v3591_v53 }
  0x3d   : > { %687 = vmatpush1.msra.mxu0 %v3598_v54  ;;  %2854 = vmatprep.subr.mxu1 %v5002_v8 }
  0x3e   : > { %688 = vmatprep.subr.mxu0 %v3605_v55  ;;  %2855 = vmatpush3.msra.mxu1 %v3649_v62 }
  0x3f   : > { %689 = vmatpush1.msra.mxu0 %v3618_v57  ;;  %2856 = vmatprep.subr.mxu1 %v5002_v8  ;;  %v3891_v57 = vld [vmem:[%s4989_s4 + $0x220] sm:$0xff] }
  0x40   : > { %690 = vmatprep.subr.mxu0 %v3624_v58  ;;  %2857 = vmatpush3.msra.mxu1 %v3668_v2  ;;  %v3783_v58 = vld [vmem:[%s4989_s4 + $0x1f8] sm:$0xff] }
  0x41   : > { %691 = vmatpush1.msra.mxu0 %v3636_v60  ;;  %2858 = vmatprep.subr.mxu1 %v5002_v8  ;;  %v3764_v60 = vld [vmem:[%s4989_s4 + $0x210] sm:$0xff]  ;;  %5102 = vst [vmem:[#allocation25_spill] sm:$0xff] %v3783_v58 }
  0x42   : > { %692 = vmatprep.subr.mxu0 %v3643_v61  ;;  %2859 = vmatpush3.msra.mxu1 %v3687_v12  ;;  %v5097_v61 = vmov 0.0   ;;  %5099 = vst [vmem:[#allocation22_spill] sm:$0xff] %v3764_v60 }
  0x43   : > { %693 = vmatpush1.msra.mxu0 %v3655_v63  ;;  %750 = vmatprep.mubr.f32.mxu0 %v5002_v8  ;;  %v3726_v63 = vld [vmem:[%s4989_s4 + $0x240] sm:$0xff] }
  0x44   : > { %694 = vmatprep.subr.mxu0 %v3662_v1  ;;  %v3707_v1 = vld [vmem:[%s4989_s4 + $0x258] sm:$0xff]  ;;  %5092 = vst [vmem:[#allocation16_spill] sm:$0xff] %v3726_v63  ;;  %2863 = vmatprep.subr.mxu1 %v5002_v8  ;;  %v3745_v8 = vld [vmem:[%s4989_s4 + $0x228] sm:$0xff] }
  0x45   : > { %695 = vmatpush1.msra.mxu0 %v3674_v6  ;;  %5090 = vst [vmem:[#allocation14_spill] sm:$0xff] %v3707_v1  ;;  %v3714_v6 = vld [vmem:[%s4989_s4 + $0x248] sm:$0xff]  ;;  %2861 = vmatmul.mubr.f32.vlgmr.msra.gmra.mxu1 %v3586_v52  ;;  %5095 = vst [vmem:[#allocation19_spill] sm:$0xff] %v3745_v8 }
  0x46   : > { %696 = vmatprep.subr.mxu0 %v3681_v11  ;;  %5091 = vst [vmem:[#allocation15_spill] sm:$0xff] %v3714_v6  ;;  %v3720_v11 = vld [vmem:[%s4989_s4 + $0x2f8] sm:$0xff]  ;;  %2895 = vmatprep.mubr.msk.f32.mxu1 %vm3213_vm1, %v5097_v61 }
  0x47   : > { %697 = vmatpush1.msra.mxu0 %v3693_v17  ;;  %v3733_v17 = vld [vmem:[%s4989_s4 + $0x230] sm:$0xff]  ;;  %2864 = vmatpush3.msra.mxu1 %v3720_v11 }
  0x48   : > { %698 = vmatprep.subr.mxu0 %v3700_v10  ;;  %5093 = vst [vmem:[#allocation17_spill] sm:$0xff] %v3733_v17  ;;  %v3739_v10 = vld [vmem:[%s4989_s4 + $0x2e0] sm:$0xff]  ;;  %2865 = vmatprep.subr.mxu1 %v5097_v61 }
  0x49   : > { %699 = vmatpush1.msra.mxu0 %v3707_v1  ;;  %5094 = vst [vmem:[#allocation18_spill] sm:$0xff] %v3739_v10  ;;  %v3752_v1 = vld [vmem:[%s4989_s4 + $0x218] sm:$0xff]  ;;  %2866 = vmatpush3.msra.mxu1 %v3739_v10  ;;  %v1578_v10 = vstv %s1577_s25 }
  0x4a   : > { %700 = vmatprep.subr.mxu0 %v3714_v6  ;;  %5096 = vst [vmem:[#allocation20_spill] sm:$0xff] %v3752_v1  ;;  %v3758_v6 = vld [vmem:[%s4989_s4 + $0x2c8] sm:$0xff]  ;;  %2867 = vmatprep.subr.mxu1 %v5097_v61  ;;  %vm1579_vm3 = vcmp.lt.s32.totalorder %v1578_v10, %v3276_v0 }
  0x4b   : > { %701 = vmatpush1.msra.mxu0 %v3726_v63  ;;  %5098 = vst [vmem:[#allocation21_spill] sm:$0xff] %v3758_v6  ;;  %v3771_v63 = vld [vmem:[%s4989_s4 + $0x200] sm:$0xff]  ;;  %2868 = vmatpush3.msra.mxu1 %v3758_v6  ;;  %v3900_v10 = vld [vmem:[%s4989_s4 + $0x208] sm:$0xff] }
  0x4c   : > { %702 = vmatprep.subr.mxu0 %v3733_v17  ;;  %5100 = vst [vmem:[#allocation23_spill] sm:$0xff] %v3771_v63  ;;  %v3777_v17 = vld [vmem:[%s4989_s4 + $0x2b0] sm:$0xff]  ;;  %2869 = vmatprep.subr.mxu1 %v5097_v61  ;;  %v3802_v6 = vld [vmem:[%s4989_s4 + $0x1e0] sm:$0xff] }
  0x4d   : > { %703 = vmatpush1.msra.mxu0 %v3745_v8  ;;  %5101 = vst [vmem:[#allocation24_spill] sm:$0xff] %v3777_v17  ;;  %v3790_v8 = vld [vmem:[%s4989_s4 + $0x1e8] sm:$0xff]  ;;  %5105 = vst [vmem:[#allocation28_spill] sm:$0xff] %v3802_v6  ;;  %2870 = vmatpush3.msra.mxu1 %v3777_v17 }
  0x4e   : > { %704 = vmatprep.subr.mxu0 %v3752_v1  ;;  %5103 = vst [vmem:[#allocation26_spill] sm:$0xff] %v3790_v8  ;;  %v3796_v1 = vld [vmem:[%s4989_s4 + $0x298] sm:$0xff]  ;;  %2871 = vmatprep.subr.mxu1 %v5097_v61  ;;  %v3821_v17 = vld [vmem:[%s4989_s4 + $0x1c8] sm:$0xff] }
  0x4f   : > { %705 = vmatpush1.msra.mxu0 %v3764_v60  ;;  %5104 = vst [vmem:[#allocation27_spill] sm:$0xff] %v3796_v1  ;;  %v3809_v60 = vld [vmem:[%s4989_s4 + $0x1d0] sm:$0xff]  ;;  %5108 = vst [vmem:[#allocation31_spill] sm:$0xff] %v3821_v17  ;;  %2872 = vmatpush3.msra.mxu1 %v3796_v1 }
  0x50   : > { %706 = vmatprep.subr.mxu0 %v3771_v63  ;;  %5106 = vst [vmem:[#allocation29_spill] sm:$0xff] %v3809_v60  ;;  %v3815_v63 = vld [vmem:[%s4989_s4 + $0x280] sm:$0xff]  ;;  %2873 = vmatprep.subr.mxu1 %v5097_v61  ;;  %v3841_v1 = vld [vmem:[%s4989_s4 + $0x1b0] sm:$0xff] }
  0x51   : > { %707 = vmatpush1.msra.mxu0 %v3783_v58  ;;  %5107 = vst [vmem:[#allocation30_spill] sm:$0xff] %v3815_v63  ;;  %v3829_v58 = vld [vmem:[%s4989_s4 + $0x1b8] sm:$0xff]  ;;  %5111 = vst [vmem:[#allocation34_spill] sm:$0xff] %v3841_v1  ;;  %2874 = vmatpush3.msra.mxu1 %v3815_v63 }
  0x52   : > { %708 = vmatprep.subr.mxu0 %v3790_v8  ;;  %5109 = vst [vmem:[#allocation32_spill] sm:$0xff] %v3829_v58  ;;  %v3835_v8 = vld [vmem:[%s4989_s4 + $0x268] sm:$0xff]  ;;  %2875 = vmatprep.subr.mxu1 %v5097_v61  ;;  %v3860_v63 = vld [vmem:[%s4989_s4 + $0x198] sm:$0xff] }
  0x53   : > { %709 = vmatpush1.msra.mxu0 %v3802_v6  ;;  %5110 = vst [vmem:[#allocation33_spill] sm:$0xff] %v3835_v8  ;;  %v3848_v6 = vld [vmem:[%s4989_s4 + $0x1a0] sm:$0xff]  ;;  %5114 = vst [vmem:[#allocation37_spill] sm:$0xff] %v3860_v63  ;;  %2876 = vmatpush3.msra.mxu1 %v3835_v8 }
  0x54   : > { %710 = vmatprep.subr.mxu0 %v3809_v60  ;;  %5112 = vst [vmem:[#allocation35_spill] sm:$0xff] %v3848_v6  ;;  %v3854_v60 = vld [vmem:[%s4989_s4 + $0x250] sm:$0xff]  ;;  %2877 = vmatprep.subr.mxu1 %v5097_v61  ;;  %v3880_v8 = vld [vmem:[%s4989_s4 + $0x180] sm:$0xff] }
  0x55   : > { %711 = vmatpush1.msra.mxu0 %v3821_v17  ;;  %5113 = vst [vmem:[#allocation36_spill] sm:$0xff] %v3854_v60  ;;  %v3868_v17 = vld [vmem:[%s4989_s4 + $0x188] sm:$0xff]  ;;  %5116 = vst [vmem:[#allocation39_spill] sm:$0xff] %v3880_v8  ;;  %2878 = vmatpush3.msra.mxu1 %v3854_v60 }
  0x56   : > { %712 = vmatprep.subr.mxu0 %v3829_v58  ;;  %5115 = vst [vmem:[#allocation38_spill] sm:$0xff] %v3868_v17  ;;  %v3874_v58 = vld [vmem:[%s4989_s4 + $0x238] sm:$0xff]  ;;  %2879 = vmatprep.subr.mxu1 %v5097_v61 }
  0x57   : > { %713 = vmatpush1.msra.mxu0 %v3841_v1  ;;  %v3885_v1 = vld [vmem:[#allocation3] sm:$0xff]  ;;  %2880 = vmatpush3.msra.mxu1 %v3874_v58 }
  0x58   : > { %714 = vmatprep.subr.mxu0 %v3848_v6  ;;  %v2064_v6 = vstv %s2063_s24  ;;  %2881 = vmatprep.subr.mxu1 %v5097_v61 }
  0x59   : > { %715 = vmatpush1.msra.mxu0 %v3860_v63  ;;  %v5117_v63 = vmov 0   ;;  %2882 = vmatpush3.msra.mxu1 %v3891_v57  ;;  %vm2065_vm4 = vcmp.lt.s32.totalorder %v2064_v6, %v3276_v0 }
  0x5a   : > { %716 = vmatprep.subr.mxu0 %v3868_v17  ;;  %v1580_v60 = vsel %vm1579_vm3, 1, %v5117_v63  ;;  %2883 = vmatprep.subr.mxu1 %v5097_v61  ;;  %v3919_v17 = vld [vmem:[%s4989_s4 + $0x1d8] sm:$0xff]  ;;  %v2066_v6 = vsel %vm2065_vm4, 1, %v5117_v63 }
  0x5b   : > { %717 = vmatpush1.msra.mxu0 %v3880_v8  ;;  %v3910_v8 = vld [vmem:[%s4989_s4 + $0x1f0] sm:$0xff]  ;;  %2884 = vmatpush3.msra.mxu1 %v3900_v10 }
  0x5c   : > { %751 = vmatmul.mubr.f32.vlgmr.msra.gmra.mxu0 %v3885_v1  ;;  %1582 = vperm.xlu0 %3121, %v1580_v60   ;;  %v3929_v60 = vld [vmem:[%s4989_s4 + $0x1c0] sm:$0xff] }
  0x5d   : > { %2885 = vmatprep.subr.mxu1 %v5097_v61  ;;  %929 = vmatprep.subr.mxu0 %v3314_v3  ;;  %v3937_v3 = vld [vmem:[%s4989_s4 + $0x1a8] sm:$0xff] }
  0x5e   : > { %2886 = vmatpush3.msra.mxu1 %v3910_v8  ;;  %930 = vmatpush1.msra.mxu0 %v3319_v4  ;;  %v3946_v4 = vld [vmem:[%s4989_s4 + $0x190] sm:$0xff] }
  0x5f   : > { %2887 = vmatprep.subr.mxu1 %v5097_v61  ;;  %931 = vmatprep.subr.mxu0 %v3324_v5  ;;  %v1092_v5 = vstv %s1091_s17 }
  0x60   : > { %2888 = vmatpush3.msra.mxu1 %v3919_v17  ;;  %2068 = vperm.xlu0 %3121, %v2066_v6   ;;  %vm1093_vm5 = vcmp.lt.s32.totalorder %v1092_v5, %v3276_v0 }
  0x61   : > { %2889 = vmatprep.subr.mxu1 %v5097_v61  ;;  %932 = vmatpush1.msra.mxu0 %v3331_v7  ;;  %v1335_v7 = vstv %s1334_s13 }
  0x62   : > { %2890 = vmatpush3.msra.mxu1 %v3929_v60  ;;  %933 = vmatprep.subr.mxu0 %v3340_v9  ;;  %vm1336_vm6 = vcmp.lt.s32.totalorder %v1335_v7, %v3276_v0  ;;  %v1094_v9 = vsel %vm1093_vm5, 1, %v5117_v63 }
  0x63   : > { %2891 = vmatprep.subr.mxu1 %v5097_v61  ;;  %934 = vmatpush1.msra.mxu0 %v3348_v13  ;;  %v1821_v13 = vstv %s1820_s16 }
  0x64   : > { %2892 = vmatpush3.msra.mxu1 %v3937_v3  ;;  %935 = vmatprep.subr.mxu0 %v3357_v14  ;;  %v1337_v14 = vsel %vm1336_vm6, 1, %v5117_v63  ;;  %vm1822_vm7 = vcmp.lt.s32.totalorder %v1821_v13, %v3276_v0 }
  0x65   : > { %2893 = vmatprep.subr.mxu1 %v5097_v61  ;;  %936 = vmatpush1.msra.mxu0 %v3364_v15  ;;  %v2305_v15 = vstv %s3279_s11 }
  0x66   : > { %2894 = vmatpush3.msra.mxu1 %v3946_v4  ;;  %937 = vmatprep.subr.mxu0 %v3370_v16  ;;  %v1823_v16 = vsel %vm1822_vm7, 1, %v5117_v63  ;;  %vm2306_vm8 = vcmp.lt.s32.totalorder %v2305_v15, %v3276_v0 }
  0x67   : > { %2896 = vmatmul.mubr.f32.vlgmr.msra.gmra.mxu1 %v3885_v1  ;;  %2898 = vmatprep.subr.mxu1 %v5097_v61 }
  0x68   : > { %2899 = vmatpush3.msra.mxu1 %v3407_v23  ;;  %938 = vmatpush1.msra.mxu0 %v3378_v18  ;;  %v2307_v18 = vsel %vm2306_vm8, 1, %v5117_v63 }
  0x69   : > { %2900 = vmatprep.subr.mxu1 %v5097_v61  ;;  %939 = vmatprep.subr.mxu0 %v3384_v19  ;;  %v428_v19 = vlaneseq }
  0x6a   : > { %2901 = vmatpush3.msra.mxu1 %v3419_v25  ;;  %940 = vmatpush1.msra.mxu0 %v3390_v20  ;;  %v375_v25 = vld [vmem:[%s3292_s22] sm:$0xff] }
  0x6b   : > { %2902 = vmatprep.subr.mxu1 %v5097_v61  ;;  %941 = vmatprep.subr.mxu0 %v3396_v21  ;;  %v429_v20 = vshrl.u32 %v428_v19, 7 }
  0x6c   : > { %2903 = vmatpush3.msra.mxu1 %v3431_v27  ;;  %942 = vmatpush1.msra.mxu0 %v3402_v22  ;;  %v426_v22 = vld [vmem:[%s4990_s5] sm:$0x7] }
  0x6d   : > { %2904 = vmatprep.subr.mxu1 %v5097_v61  ;;  %943 = vmatprep.subr.mxu0 %v3413_v24  ;;  %v4028_v21 = vsub.s32 0, %v429_v20  ;;  %v4034_v24 = vsub.s32 1, %v429_v20 }
  0x6e   : > { %2905 = vmatpush3.msra.mxu1 %v3450_v30  ;;  %944 = vmatpush1.msra.mxu0 %v3425_v26 }
  0x6f   : > { %2906 = vmatprep.subr.mxu1 %v5097_v61  ;;  %945 = vmatprep.subr.mxu0 %v3437_v28  ;;  %5118 = vst [vmem:[#allocation40_spill] sm:$0xff] %v4028_v21  ;;  %v431_v23 = vrot.slane %v426_v22, %v4028_v21  ;;  %5119 = vst [vmem:[#allocation41_spill] sm:$0xff] %v4034_v24  ;;  %v435_v27 = vrot.slane %v426_v22, %v4034_v24 }
  0x70   : > { %2907 = vmatpush3.msra.mxu1 %v3469_v33  ;;  %946 = vmatpush1.msra.mxu0 %v3444_v29 }
  0x71   : > { %2908 = vmatprep.subr.mxu1 %v5097_v61  ;;  %947 = vmatprep.subr.mxu0 %v3456_v31 }
  0x72   : > { %2909 = vmatpush3.msra.mxu1 %v3488_v36  ;;  %948 = vmatpush1.msra.mxu0 %v3463_v32  ;;  %v376_v32 = vld [vmem:[%s3292_s22 + $0x8] sm:$0xff] }
  0x73   : > { %2910 = vmatprep.subr.mxu1 %v5097_v61  ;;  %949 = vmatprep.subr.mxu0 %v3475_v34 }
  0x74   : > { %2911 = vmatpush3.msra.mxu1 %v3507_v39  ;;  %950 = vmatpush1.msra.mxu0 %v3482_v35  ;;  %v4039_v39 = vsub.s32 2, %v429_v20 }
  0x75   : > { %2912 = vmatprep.subr.mxu1 %v5097_v61  ;;  %951 = vmatprep.subr.mxu0 %v3494_v37 }
  0x76   : > { %2913 = vmatpush3.msra.mxu1 %v3526_v42  ;;  %952 = vmatpush1.msra.mxu0 %v3501_v38  ;;  %v439_v42 = vrot.slane %v426_v22, %v4039_v39 }
  0x77   : > { %2914 = vmatprep.subr.mxu1 %v5097_v61  ;;  %953 = vmatprep.subr.mxu0 %v3513_v40  ;;  %v2505_v40 = vld [vmem:[%s4990_s5 + $0x3] sm:$0x7] }
  0x78   : > { %2915 = vmatpush3.msra.mxu1 %v3545_v45  ;;  %954 = vmatpush1.msra.mxu0 %v3520_v41  ;;  %v674_v41 = vrot.slane %v2505_v40, %v4028_v21 }
  0x79   : > { %2916 = vmatprep.subr.mxu1 %v5097_v61  ;;  %955 = vmatprep.subr.mxu0 %v3532_v43 }
  0x7a   : > { %2917 = vmatpush3.msra.mxu1 %v3564_v48  ;;  %956 = vmatpush1.msra.mxu0 %v3539_v44  ;;  %v2454_v44 = vld [vmem:[%s3297_s26 + $0x48] sm:$0xff] }
  0x7b   : > { %2918 = vmatprep.subr.mxu1 %v5097_v61  ;;  %957 = vmatprep.subr.mxu0 %v3551_v46 }
  0x7c   : > { %2919 = vmatpush3.msra.mxu1 %v3583_v51  ;;  %958 = vmatpush1.msra.mxu0 %v3558_v47 }
  0x7d   : > { %2920 = vmatprep.subr.mxu1 %v5097_v61  ;;  %959 = vmatprep.subr.mxu0 %v3570_v49  ;;  %v678_v49 = vrot.slane %v2505_v40, %v4034_v24 }
  0x7e   : > { %2921 = vmatpush3.msra.mxu1 %v3611_v56  ;;  %960 = vmatpush1.msra.mxu0 %v3577_v50  ;;  %v377_v56 = vld [vmem:[%s3292_s22 + $0x10] sm:$0xff] }
  0x7f   : > { %2922 = vmatprep.subr.mxu1 %v5097_v61  ;;  %993 = vmatprep.mubr.f32.mxu0 %v5097_v61 }
  0x80   : > { %2923 = vmatpush3.msra.mxu1 %v3630_v59  ;;  %2930 = vmatprep.mubr.msk.f32.mxu1 %vm3213_vm1, %v5097_v61 }
  0x81   : > { %2924 = vmatprep.subr.mxu1 %v5097_v61  ;;  %1172 = vmatprep.subr.mxu0 %v3591_v53 }
  0x82   : > { %2925 = vmatpush3.msra.mxu1 %v3649_v62  ;;  %1096 = vperm.xlu1 %3122, %v1094_v9  }
  0x83   : > { %2926 = vmatprep.subr.mxu1 %v5097_v61 }
  0x84   : > { %2927 = vmatpush3.msra.mxu1 %v3668_v2  ;;  %v2455_v2 = vld [vmem:[%s3297_s26 + $0x50] sm:$0xff] }
  0x85   : > { %2928 = vmatprep.subr.mxu1 %v5097_v61 }
  0x86   : > { %2929 = vmatpush3.msra.mxu1 %v3687_v12  ;;  %1339 = vperm.xlu1 %3122, %v1337_v14  }
  0x87   : > { %2933 = vmatprep.subr.mxu1 %v5097_v61 }
  0x8a   : > { %1825 = vperm.xlu1 %3122, %v1823_v16  }
  0x8e   : > { %2309 = vperm.xlu1 %3122, %v2307_v18  }
  0x9b   : > { %v610_v19 = vpop.permute.xlu0 %609 }
  0x9c   : > { %vm611_vm9 = vcmp.eq.s32.totalorder %v610_v19, 1 }
  0xfc   : > { %v509_v26 = vpop.f32.mrf.mxu0 }
  0xfd   : > { %v510_v0 = vadd.f32 %v509_v26, %v431_v23 }
  0xfe   : > { %v511_v28 = vpop.f32.mrf.mxu0 }
  0xff   : > { %v584_v29 = vadd.f32 %v510_v0, %v375_v25  ;;  %v512_v31 = vadd.f32 %v511_v28, %v435_v27  ;;  %v682_v0 = vrot.slane %v2505_v40, %v4039_v39  ;;  %v5120_v28 = vld [vmem:[#allocation4_spill] sm:$0xff]  ;;  %v5130_v40 = vld [vmem:[#allocation27_spill] sm:$0xff] }
 0x101   : > { %v2452_v30 = vmul.f32 -1.442695, %v584_v29  ;;  %v591_v33 = vadd.f32 %v512_v31, %v376_v32  ;;  %v5122_v29 = vld [vmem:[#allocation5_spill] sm:$0xff]  ;;  %v5123_v31 = vld [vmem:[#allocation6_spill] sm:$0xff]  ;;  %v5125_v32 = vld [vmem:[#allocation7_spill] sm:$0xff] }
 0x103   : > { %3123 = vpow2.f32 %v2452_v30  ;;  %v2453_v34 = vmul.f32 -1.442695, %v591_v33  ;;  %v5127_v33 = vld [vmem:[#allocation24_spill] sm:$0xff] }
 0x105   : > { %v580_v35 = vpop.f32.mrf.mxu1  ;;  %3125 = vpow2.f32 %v2453_v34 }
 0x106   : > { %v581_v48 = vadd.f32 %v580_v35, %v439_v42  ;;  %v2456_v35 = vld [vmem:[%s3297_s26 + $0x58] sm:$0xff] }
 0x107   : > { %v2862_v36 = vpop.f32.mrf.mxu1 }
 0x108   : > { %v5128_v36 = vld [vmem:[#allocation9_spill] sm:$0xff] }
 0x110   : > { %v3124_v37 = vpop.eup %3123 }
 0x111   : > { %v588_v38 = vadd.f32 1.0, %v3124_v37 }
 0x112   : > { %v3126_v43 = vpop.eup %3125 }
 0x113   : > { %3127 = vrcp.f32 %v588_v38  ;;  %v595_v46 = vadd.f32 1.0, %v3126_v43  ;;  %v5129_v38 = vld [vmem:[#allocation10_spill] sm:$0xff]  ;;  %v5132_v43 = vld [vmem:[#allocation12_spill] sm:$0xff] }
 0x115   : > { %3129 = vrcp.f32 %v595_v46  ;;  %v5135_v46 = vld [vmem:[#allocation14_spill] sm:$0xff] }
 0x11c   : > { %v752_v45 = vpop.f32.mrf.mxu0 }
 0x11d   : > { %v753_v47 = vadd.f32 %v752_v45, %v674_v41  ;;  %v5131_v41 = vld [vmem:[#allocation11_spill] sm:$0xff]  ;;  %v5134_v45 = vld [vmem:[#allocation13_spill] sm:$0xff] }
 0x11e   : > { %v754_v50 = vpop.f32.mrf.mxu0 }
 0x11f   : > { %v827_v51 = vadd.f32 %v2454_v44, %v753_v47  ;;  %v755_v63 = vadd.f32 %v754_v50, %v678_v49  ;;  %v5133_v44 = vld [vmem:[#allocation30_spill] sm:$0xff]  ;;  %v5136_v47 = vld [vmem:[#allocation33_spill] sm:$0xff]  ;;  %v5138_v49 = vld [vmem:[#allocation16_spill] sm:$0xff] }
 0x120   : > { %v3128_v53 = vpop.eup %3127  ;;  %v5139_v50 = vld [vmem:[#allocation36_spill] sm:$0xff] }
 0x121   : > { %v2506_v59 = vmul.f32 -1.442695, %v827_v51  ;;  %v598_v62 = vmul.f32 %v3128_v53, %v581_v48  ;;  %v834_v6 = vadd.f32 %v2455_v2, %v755_v63  ;;  %v5137_v48 = vld [vmem:[#allocation15_spill] sm:$0xff]  ;;  %v5140_v51 = vld [vmem:[#allocation17_spill] sm:$0xff] }
 0x122   : > { %v3130_v13 = vpop.eup %3129  ;;  %v5141_v53 = vld [vmem:[#allocation19_spill] sm:$0xff]  ;;  %v5145_v63 = vld [vmem:[#allocation25_spill] sm:$0xff] }
 0x123   : > { %3131 = vpow2.f32 %v2506_v59  ;;  %v599_v12 = vadd.f32 %v598_v62, %v377_v56  ;;  %v2507_v5 = vmul.f32 -1.442695, %v834_v6  ;;  %v601_v16 = vsub.f32 1.0, %v3130_v13  ;;  %v5142_v56 = vld [vmem:[#allocation20_spill] sm:$0xff]  ;;  %v5143_v59 = vld [vmem:[#allocation22_spill] sm:$0xff]  ;;  %v5144_v62 = vld [vmem:[#allocation23_spill] sm:$0xff] }
 0x124   : > { %v603_v22 = vmul.f32 %v3130_v13, %v3586_v52  ;;  %v5148_v6 = vld [vmem:[#allocation29_spill] sm:$0xff] }
 0x125   : > { %3133 = vtanh.f32 %v599_v12  ;;  %v5146_v12 = vld [vmem:[#allocation26_spill] sm:$0xff] }
 0x126   : > { %3135 = vpow2.f32 %v2507_v5 }
 0x127   : > { %v823_v7 = vpop.f32.mrf.mxu1 }
 0x129   : > { %v2897_v9 = vpop.f32.mrf.mxu1 }
 0x12a   : > { %v5151_v9 = vld [vmem:[#allocation34_spill] sm:$0xff] }
 0x130   : > { %v3132_v14 = vpop.eup %3131 }
 0x131   : > { %v831_v15 = vadd.f32 1.0, %v3132_v14  ;;  %v5152_v14 = vld [vmem:[#allocation35_spill] sm:$0xff] }
 0x132   : > { %v3134_v18 = vpop.eup %3133 }
 0x133   : > { %3137 = vrcp.f32 %v831_v15  ;;  %v602_v20 = vmul.f32 %v3134_v18, %v601_v16  ;;  %v3136_v27 = vpop.eup %3135  ;;  %v854_v15 = vpop.permute.xlu0 %853  ;;  %v5154_v18 = vld [vmem:[#allocation38_spill] sm:$0xff] }
 0x134   : > { %v838_v30 = vadd.f32 1.0, %v3136_v27  ;;  %vm855_vm10 = vcmp.eq.s32.totalorder %v854_v15, 1  ;;  %v4182_v27 = vld [vmem:[%s4989_s4 + $0x138] sm:$0xff] }
 0x135   : > { %v604_v23 = vadd.f32 %v603_v22, %v602_v20  ;;  %v4156_v22 = vld [vmem:[%s4989_s4 + $0x158] sm:$0xff] }
 0x136   : > { %3139 = vrcp.f32 %v838_v30  ;;  %v4206_v30 = vld [vmem:[%s4989_s4 + $0x130] sm:$0xff] }
 0x137   : > { %v612_v25 = vsel %vm611_vm9, %v604_v23, 0.0  ;;  %v4052_v26 = vsel %vm611_vm9, %v604_v23, %v3586_v52  ;;  %v5121_v52 = vld [vmem:[#allocation18_spill] sm:$0xff]  ;;  %v4163_v23 = vld [vmem:[%s4989_s4 + $0x150] sm:$0xff] }
 0x138   : > { %613 = vst [vmem:[%s3287_s19] sm:$0xff] %v612_v25  ;;  %994 = vmatmul.mubr.f32.vlgmr.msra.gmra.mxu0 %v4052_v26  ;;  %2931 = vmatmul.mubr.f32.vlgmr.msra.gmra.mxu1 %v4052_v26  ;;  %v4168_v25 = vld [vmem:[%s4989_s4 + $0x160] sm:$0xff] }
 0x139   : > { %1173 = vmatpush1.msra.mxu0 %v3598_v54  ;;  %2934 = vmatpush3.msra.mxu1 %v3720_v11  ;;  %v824_v54 = vadd.f32 %v823_v7, %v682_v0  ;;  %v5124_v11 = vld [vmem:[#allocation21_spill] sm:$0xff]  ;;  %v4175_v0 = vld [vmem:[%s4989_s4 + $0x140] sm:$0xff] }
 0x13a   : > { %1174 = vmatprep.subr.mxu0 %v3605_v55  ;;  %2935 = vmatprep.subr.mxu1 %v5097_v61  ;;  %v5126_v55 = vld [vmem:[#allocation8_spill] sm:$0xff] }
 0x13b   : > { %1175 = vmatpush1.msra.mxu0 %v5120_v28  ;;  %2936 = vmatpush3.msra.mxu1 %v5121_v52  ;;  %v4187_v28 = vld [vmem:[%s4989_s4 + $0x148] sm:$0xff] }
 0x13c   : > { %1176 = vmatprep.subr.mxu0 %v5122_v29  ;;  %2937 = vmatprep.subr.mxu1 %v5097_v61  ;;  %v4194_v52 = vld [vmem:[%s4989_s4 + $0x128] sm:$0xff]  ;;  %v4201_v29 = vld [vmem:[%s4989_s4 + $0x120] sm:$0xff] }
 0x13d   : > { %1177 = vmatpush1.msra.mxu0 %v5123_v31  ;;  %2938 = vmatpush3.msra.mxu1 %v5124_v11  ;;  %v4220_v31 = vld [vmem:[%s4989_s4 + $0x108] sm:$0xff]  ;;  %v4225_v11 = vld [vmem:[%s4989_s4 + $0x118] sm:$0xff] }
 0x13e   : > { %1178 = vmatprep.subr.mxu0 %v5125_v32  ;;  %2939 = vmatprep.subr.mxu1 %v5097_v61  ;;  %v4232_v32 = vld [vmem:[%s4989_s4 + $0xf8] sm:$0xff] }
 0x13f   : > { %1179 = vmatpush1.msra.mxu0 %v5126_v55  ;;  %2940 = vmatpush3.msra.mxu1 %v5127_v33  ;;  %v4239_v55 = vld [vmem:[%s4989_s4 + $0xf0] sm:$0xff]  ;;  %v4244_v33 = vld [vmem:[%s4989_s4 + $0x100] sm:$0xff] }
 0x140   : > { %v3138_v34 = vpop.eup %3137  ;;  %1180 = vmatprep.subr.mxu0 %v5128_v36  ;;  %2941 = vmatprep.subr.mxu1 %v5097_v61  ;;  %v4263_v36 = vld [vmem:[%s4989_s4 + $0xe8] sm:$0xff] }
 0x141   : > { %v841_v37 = vmul.f32 %v3138_v34, %v824_v54  ;;  %1181 = vmatpush1.msra.mxu0 %v5129_v38  ;;  %2942 = vmatpush3.msra.mxu1 %v5130_v40  ;;  %v4213_v54 = vld [vmem:[%s4989_s4 + $0x110] sm:$0xff]  ;;  %v4251_v34 = vld [vmem:[%s4989_s4 + $0xe0] sm:$0xff] }
 0x142   : > { %1182 = vmatprep.subr.mxu0 %v5131_v41  ;;  %2943 = vmatprep.subr.mxu1 %v5097_v61  ;;  %v4277_v38 = vld [vmem:[%s4989_s4 + $0xc0] sm:$0xff]  ;;  %v4282_v40 = vld [vmem:[%s4989_s4 + $0xd0] sm:$0xff] }
 0x143   : > { %v842_v42 = vadd.f32 %v2456_v35, %v841_v37  ;;  %1183 = vmatpush1.msra.mxu0 %v5132_v43  ;;  %2944 = vmatpush3.msra.mxu1 %v5133_v44  ;;  %v3140_v2 = vpop.eup %3139  ;;  %v4258_v35 = vld [vmem:[%s4989_s4 + $0xd8] sm:$0xff]  ;;  %v4270_v37 = vld [vmem:[%s4989_s4 + $0xc8] sm:$0xff]  ;;  %v4289_v41 = vld [vmem:[%s4989_s4 + $0xb0] sm:$0xff] }
 0x144   : > { %1184 = vmatprep.subr.mxu0 %v5134_v45  ;;  %2945 = vmatprep.subr.mxu1 %v5097_v61  ;;  %v844_v5 = vsub.f32 1.0, %v3140_v2  ;;  %v4301_v43 = vld [vmem:[%s4989_s4 + $0xb8] sm:$0xff]  ;;  %v4315_v45 = vld [vmem:[%s4989_s4 + $0x90] sm:$0xff] }
 0x145   : > { %3141 = vtanh.f32 %v842_v42  ;;  %1185 = vmatpush1.msra.mxu0 %v5135_v46  ;;  %2946 = vmatpush3.msra.mxu1 %v5136_v47  ;;  %v4296_v42 = vld [vmem:[%s4989_s4 + $0xa8] sm:$0xff]  ;;  %v4308_v44 = vld [vmem:[%s4989_s4 + $0x98] sm:$0xff]  ;;  %v4320_v46 = vld [vmem:[%s4989_s4 + $0xa0] sm:$0xff] }
 0x146   : > { %1186 = vmatprep.subr.mxu0 %v5137_v48  ;;  %2947 = vmatprep.subr.mxu1 %v5097_v61  ;;  %v4327_v47 = vld [vmem:[%s4989_s4 + $0x80] sm:$0xff]  ;;  %v4334_v48 = vld [vmem:[%s4989_s4 + $0x78] sm:$0xff] }
 0x147   : > { %1187 = vmatpush1.msra.mxu0 %v5138_v49  ;;  %2948 = vmatpush3.msra.mxu1 %v5139_v50  ;;  %v4339_v49 = vld [vmem:[%s4989_s4 + $0x88] sm:$0xff] }
 0x148   : > { %1188 = vmatprep.subr.mxu0 %v5140_v51  ;;  %2949 = vmatprep.subr.mxu1 %v5097_v61  ;;  %v4346_v50 = vld [vmem:[%s4989_s4 + $0x68] sm:$0xff]  ;;  %v4353_v51 = vld [vmem:[%s4989_s4 + $0x60] sm:$0xff] }
 0x149   : > { %1189 = vmatpush1.msra.mxu0 %v5141_v53  ;;  %2950 = vmatpush3.msra.mxu1 %v3874_v58  ;;  %v5147_v58 = vld [vmem:[#allocation28_spill] sm:$0xff] }
 0x14a   : > { %1190 = vmatprep.subr.mxu0 %v5142_v56  ;;  %2951 = vmatprep.subr.mxu1 %v5097_v61  ;;  %v4358_v53 = vld [vmem:[%s4989_s4 + $0x70] sm:$0xff] }
 0x14b   : > { %1191 = vmatpush1.msra.mxu0 %v5143_v59  ;;  %2952 = vmatpush3.msra.mxu1 %v3891_v57  ;;  %v5149_v57 = vld [vmem:[#allocation31_spill] sm:$0xff]  ;;  %5156 = vst [vmem:[#allocation4_spill] sm:$0xff] %v4358_v53  ;;  %v4365_v56 = vld [vmem:[%s4989_s4 + $0x50] sm:$0xff] }
 0x14c   : > { %1192 = vmatprep.subr.mxu0 %v5144_v62  ;;  %2953 = vmatprep.subr.mxu1 %v5097_v61  ;;  %5157 = vst [vmem:[#allocation18_spill] sm:$0xff] %v4365_v56  ;;  %v4372_v59 = vld [vmem:[%s4989_s4 + $0x48] sm:$0xff]  ;;  %v4377_v62 = vld [vmem:[%s4989_s4 + $0x58] sm:$0xff] }
 0x14d   : > { %1193 = vmatpush1.msra.mxu0 %v5145_v63  ;;  %2954 = vmatpush3.msra.mxu1 %v3900_v10  ;;  %v5150_v10 = vld [vmem:[#allocation32_spill] sm:$0xff]  ;;  %5158 = vst [vmem:[#allocation5_spill] sm:$0xff] %v4372_v59  ;;  %5159 = vst [vmem:[#allocation6_spill] sm:$0xff] %v4377_v62  ;;  %v4384_v63 = vld [vmem:[%s4989_s4 + $0x38] sm:$0xff] }
 0x14e   : > { %1194 = vmatprep.subr.mxu0 %v5146_v12  ;;  %2955 = vmatprep.subr.mxu1 %v5097_v61  ;;  %5160 = vst [vmem:[#allocation21_spill] sm:$0xff] %v4384_v63  ;;  %v4396_v12 = vld [vmem:[%s4989_s4 + $0x40] sm:$0xff] }
 0x14f   : > { %1195 = vmatpush1.msra.mxu0 %v5147_v58  ;;  %2956 = vmatpush3.msra.mxu1 %v3910_v8  ;;  %v846_v8 = vmul.f32 %v3140_v2, %v3885_v1  ;;  %v4391_v2 = vld [vmem:[%s4989_s4 + $0x30] sm:$0xff]  ;;  %5162 = vst [vmem:[#allocation8_spill] sm:$0xff] %v4396_v12  ;;  %v4403_v58 = vld [vmem:[%s4989_s4 + $0x20] sm:$0xff] }
 0x150   : > { %1196 = vmatprep.subr.mxu0 %v5148_v6  ;;  %2957 = vmatprep.subr.mxu1 %v5097_v61  ;;  %5161 = vst [vmem:[#allocation7_spill] sm:$0xff] %v4391_v2  ;;  %5163 = vst [vmem:[#allocation24_spill] sm:$0xff] %v4403_v58  ;;  %v4410_v6 = vld [vmem:[%s4989_s4 + $0x18] sm:$0xff] }
 0x151   : > { %1197 = vmatpush1.msra.mxu0 %v5149_v57  ;;  %2958 = vmatpush3.msra.mxu1 %v3919_v17  ;;  %v5153_v17 = vld [vmem:[#allocation37_spill] sm:$0xff]  ;;  %5164 = vst [vmem:[#allocation9_spill] sm:$0xff] %v4410_v6  ;;  %v4415_v57 = vld [vmem:[%s4989_s4 + $0x28] sm:$0xff] }
 0x152   : > { %v3142_v7 = vpop.eup %3141  ;;  %1198 = vmatprep.subr.mxu0 %v5150_v10  ;;  %2959 = vmatprep.subr.mxu1 %v5097_v61  ;;  %5165 = vst [vmem:[#allocation10_spill] sm:$0xff] %v4415_v57  ;;  %v4434_v10 = vld [vmem:[%s4989_s4 + $0x10] sm:$0xff] }
 0x153   : > { %1199 = vmatpush1.msra.mxu0 %v5151_v9  ;;  %2960 = vmatpush3.msra.mxu1 %v3929_v60  ;;  %v845_v13 = vmul.f32 %v3142_v7, %v844_v5  ;;  %v5155_v60 = vld [vmem:[#allocation39_spill] sm:$0xff]  ;;  %v4429_v7 = vld [vmem:[%s4989_s4] sm:$0xff]  ;;  %5168 = vst [vmem:[#allocation12_spill] sm:$0xff] %v4434_v10  ;;  %v4441_v9 = vld [vmem:[%s4989_s4 + $0x2f0] sm:$0xff] }
 0x154   : > { %1200 = vmatprep.subr.mxu0 %v5152_v14  ;;  %2961 = vmatprep.subr.mxu1 %v5097_v61  ;;  %v4422_v5 = vld [vmem:[%s4989_s4 + $0x8] sm:$0xff]  ;;  %5167 = vst [vmem:[#allocation11_spill] sm:$0xff] %v4429_v7  ;;  %5169 = vst [vmem:[#allocation30_spill] sm:$0xff] %v4441_v9  ;;  %v2509_v14 = vld [vmem:[%s3292_s22 + $0x18] sm:$0xff] }
 0x155   : > { %1201 = vmatpush1.msra.mxu0 %v5153_v17  ;;  %2962 = vmatpush3.msra.mxu1 %v3937_v3  ;;  %v847_v16 = vadd.f32 %v846_v8, %v845_v13  ;;  %v4144_v3 = vld [vmem:[%s4989_s4 + $0x168] sm:$0xff]  ;;  %5166 = vst [vmem:[#allocation27_spill] sm:$0xff] %v4422_v5  ;;  %v912_v13 = vld [vmem:[%s4990_s5] sm:$0x7] }
 0x156   : > { %1202 = vmatprep.subr.mxu0 %v5154_v18  ;;  %2963 = vmatprep.subr.mxu1 %v5097_v61  ;;  %v917_v8 = vrot.slane %v912_v13, %v4028_v21  ;;  %v921_v18 = vrot.slane %v912_v13, %v4034_v24 }
 0x157   : > { %1203 = vmatpush1.msra.mxu0 %v5155_v60  ;;  %1236 = vmatprep.mubr.f32.mxu0 %v5097_v61  ;;  %v4123_v19 = vsel %vm855_vm10, %v847_v16, %v3885_v1  ;;  %v856_v20 = vsel %vm855_vm10, %v847_v16, 0.0  ;;  %v4138_v1 = vld [vmem:[%s4989_s4 + $0x170] sm:$0xff] }
 0x158   : > { %2964 = vmatpush3.msra.mxu1 %v3946_v4  ;;  %2965 = vmatprep.mubr.msk.f32.mxu1 %vm3213_vm1, %v5097_v61  ;;  %2508 = vst [vmem:[%s3302_s10 + $0x18] sm:$0xff] %v856_v20  ;;  %v4149_v4 = vld [vmem:[%s4989_s4 + $0x178] sm:$0xff] }
 0x159   : > { %1237 = vmatmul.mubr.f32.vlgmr.msra.gmra.mxu0 %v4123_v19  ;;  %2966 = vmatmul.mubr.f32.vlgmr.msra.gmra.mxu1 %v4123_v19 }
 0x15a   : > { %2968 = vmatprep.subr.mxu1 %v5097_v61  ;;  %1479 = vmatprep.mubr.f32.mxu0 %v5097_v61 }
 0x15b   : > { %3000 = vmatprep.mubr.msk.f32.mxu1 %vm3213_vm1, %v5097_v61  ;;  %1415 = vmatprep.subr.mxu0 %v4138_v1 }
 0x15c   : > { %1416 = vmatpush1.msra.mxu0 %v4144_v3  ;;  %2969 = vmatpush3.msra.mxu1 %v4149_v4 }
 0x15d   : > { %1417 = vmatprep.subr.mxu0 %v4156_v22  ;;  %2970 = vmatprep.subr.mxu1 %v5097_v61 }
 0x15e   : > { %1418 = vmatpush1.msra.mxu0 %v4163_v23  ;;  %2971 = vmatpush3.msra.mxu1 %v4168_v25 }
 0x15f   : > { %1419 = vmatprep.subr.mxu0 %v4175_v0  ;;  %2972 = vmatprep.subr.mxu1 %v5097_v61 }
 0x160   : > { %1420 = vmatpush1.msra.mxu0 %v4182_v27  ;;  %2973 = vmatpush3.msra.mxu1 %v4187_v28 }
 0x161   : > { %1421 = vmatprep.subr.mxu0 %v4194_v52  ;;  %2974 = vmatprep.subr.mxu1 %v5097_v61 }
 0x162   : > { %1422 = vmatpush1.msra.mxu0 %v4201_v29  ;;  %2975 = vmatpush3.msra.mxu1 %v4206_v30 }
 0x163   : > { %1423 = vmatprep.subr.mxu0 %v4213_v54  ;;  %2976 = vmatprep.subr.mxu1 %v5097_v61 }
 0x164   : > { %1424 = vmatpush1.msra.mxu0 %v4220_v31  ;;  %2977 = vmatpush3.msra.mxu1 %v4225_v11 }
 0x165   : > { %1425 = vmatprep.subr.mxu0 %v4232_v32  ;;  %2978 = vmatprep.subr.mxu1 %v5097_v61 }
 0x166   : > { %1426 = vmatpush1.msra.mxu0 %v4239_v55  ;;  %2979 = vmatpush3.msra.mxu1 %v4244_v33 }
 0x167   : > { %1427 = vmatprep.subr.mxu0 %v4251_v34  ;;  %2980 = vmatprep.subr.mxu1 %v5097_v61 }
 0x168   : > { %1428 = vmatpush1.msra.mxu0 %v4258_v35  ;;  %2981 = vmatpush3.msra.mxu1 %v4263_v36 }
 0x169   : > { %1429 = vmatprep.subr.mxu0 %v4270_v37  ;;  %2982 = vmatprep.subr.mxu1 %v5097_v61 }
 0x16a   : > { %1430 = vmatpush1.msra.mxu0 %v4277_v38  ;;  %2983 = vmatpush3.msra.mxu1 %v4282_v40 }
 0x16b   : > { %1431 = vmatprep.subr.mxu0 %v4289_v41  ;;  %2984 = vmatprep.subr.mxu1 %v5097_v61 }
 0x16c   : > { %1432 = vmatpush1.msra.mxu0 %v4296_v42  ;;  %2985 = vmatpush3.msra.mxu1 %v4301_v43 }
 0x16d   : > { %1433 = vmatprep.subr.mxu0 %v4308_v44  ;;  %2986 = vmatprep.subr.mxu1 %v5097_v61 }
 0x16e   : > { %1434 = vmatpush1.msra.mxu0 %v4315_v45  ;;  %2987 = vmatpush3.msra.mxu1 %v4320_v46 }
 0x16f   : > { %1435 = vmatprep.subr.mxu0 %v4327_v47  ;;  %2988 = vmatprep.subr.mxu1 %v5097_v61 }
 0x170   : > { %1436 = vmatpush1.msra.mxu0 %v4334_v48  ;;  %2989 = vmatpush3.msra.mxu1 %v4339_v49 }
 0x171   : > { %1437 = vmatprep.subr.mxu0 %v4346_v50  ;;  %2990 = vmatprep.subr.mxu1 %v5097_v61 }
 0x172   : > { %1438 = vmatpush1.msra.mxu0 %v4353_v51  ;;  %2991 = vmatpush3.msra.mxu1 %v4358_v53 }
 0x173   : > { %1439 = vmatprep.subr.mxu0 %v4365_v56  ;;  %2992 = vmatprep.subr.mxu1 %v5097_v61 }
 0x174   : > { %1440 = vmatpush1.msra.mxu0 %v4372_v59  ;;  %2993 = vmatpush3.msra.mxu1 %v4377_v62  ;;  %v2516_v62 = vld [vmem:[%s3297_s26 + $0x38] sm:$0xff] }
 0x175   : > { %1441 = vmatprep.subr.mxu0 %v4384_v63  ;;  %2994 = vmatprep.subr.mxu1 %v5097_v61 }
 0x176   : > { %1442 = vmatpush1.msra.mxu0 %v4391_v2  ;;  %2995 = vmatpush3.msra.mxu1 %v4396_v12 }
 0x177   : > { %1443 = vmatprep.subr.mxu0 %v4403_v58  ;;  %2996 = vmatprep.subr.mxu1 %v5097_v61 }
 0x178   : > { %1444 = vmatpush1.msra.mxu0 %v4410_v6  ;;  %2997 = vmatpush3.msra.mxu1 %v4415_v57 }
 0x179   : > { %1445 = vmatprep.subr.mxu0 %v4422_v5  ;;  %2998 = vmatprep.subr.mxu1 %v5097_v61  ;;  %v2510_v5 = vld [vmem:[%s3292_s22 + $0x20] sm:$0xff] }
 0x17a   : > { %1446 = vmatpush1.msra.mxu0 %v4429_v7  ;;  %2999 = vmatpush3.msra.mxu1 %v4434_v10 }
 0x17b   : > { %1658 = vmatprep.subr.mxu0 %v4441_v9  ;;  %3003 = vmatprep.subr.mxu1 %v5097_v61 }
 0x1f8   : > { %v995_v15 = vpop.f32.mrf.mxu0  ;;  %v1066_v17 = vpop.f32.mrf.mxu1 }
 0x1f9   : > { %v996_v16 = vadd.f32 %v995_v15, %v917_v8  ;;  %v4455_v8 = vld [vmem:[%s4990_s5 + $0x3] sm:$0x7] }
 0x1fa   : > { %v997_v60 = vpop.f32.mrf.mxu0  ;;  %v2932_v20 = vpop.f32.mrf.mxu1 }
 0x1fb   : > { %v1070_v10 = vadd.f32 %v2509_v14, %v996_v16  ;;  %v998_v9 = vadd.f32 %v997_v60, %v921_v18  ;;  %v1160_v14 = vrot.slane %v4455_v8, %v4028_v21  ;;  %v2511_v20 = vld [vmem:[%s3292_s22 + $0x28] sm:$0xff] }
 0x1fd   : > { %v2512_v7 = vmul.f32 -1.442695, %v1070_v10  ;;  %v1077_v57 = vadd.f32 %v2510_v5, %v998_v9  ;;  %v925_v10 = vrot.slane %v912_v13, %v4039_v39 }
 0x1ff   : > { %3143 = vpow2.f32 %v2512_v7  ;;  %v2513_v6 = vmul.f32 -1.442695, %v1077_v57  ;;  %v2515_v7 = vld [vmem:[%s3297_s26 + $0x30] sm:$0xff]  ;;  %v1067_v5 = vadd.f32 %v1066_v17, %v925_v10 }
 0x201   : > { %3145 = vpow2.f32 %v2513_v6 }
 0x20c   : > { %v3144_v58 = vpop.eup %3143 }
 0x20d   : > { %v1074_v12 = vadd.f32 1.0, %v3144_v58 }
 0x20e   : > { %v3146_v15 = vpop.eup %3145 }
 0x20f   : > { %3147 = vrcp.f32 %v1074_v12  ;;  %v1081_v16 = vadd.f32 1.0, %v3146_v15  ;;  %v1164_v12 = vrot.slane %v4455_v8, %v4034_v24  ;;  %v1097_v24 = vpop.permute.xlu1 %1096 }
 0x210   : > { %vm1098_vm11 = vcmp.eq.s32.totalorder %v1097_v24, 1  ;;  %v4492_v24 = vld [vmem:[%s4989_s4 + $0x2d0] sm:$0xff] }
 0x211   : > { %3149 = vrcp.f32 %v1081_v16  ;;  %v4511_v16 = vld [vmem:[%s4989_s4 + $0x2b8] sm:$0xff] }
 0x219   : > { %v1238_v57 = vpop.f32.mrf.mxu0  ;;  %v4461_v6 = vpop.f32.mrf.mxu1 }
 0x21a   : > { %v1239_v58 = vadd.f32 %v1238_v57, %v1160_v14 }
 0x21b   : > { %v1240_v9 = vpop.f32.mrf.mxu0  ;;  %v2967_v18 = vpop.f32.mrf.mxu1 }
 0x21c   : > { %v3148_v60 = vpop.eup %3147  ;;  %v1313_v2 = vadd.f32 %v2515_v7, %v1239_v58  ;;  %v1241_v13 = vadd.f32 %v1240_v9, %v1164_v12  ;;  %v4516_v58 = vld [vmem:[%s4989_s4 + $0x2c8] sm:$0xff]  ;;  %v1168_v9 = vrot.slane %v4455_v8, %v4039_v39  ;;  %v4544_v8 = vld [vmem:[%s4989_s4 + $0x290] sm:$0xff] }
 0x21d   : > { %v1084_v63 = vmul.f32 %v3148_v60, %v1067_v5  ;;  %v4523_v5 = vld [vmem:[%s4989_s4 + $0x2a8] sm:$0xff]  ;;  %v4532_v60 = vld [vmem:[%s4989_s4 + $0x2a0] sm:$0xff] }
 0x21e   : > { %v2567_v21 = vmul.f32 -1.442695, %v1313_v2  ;;  %v1320_v59 = vadd.f32 %v2516_v62, %v1241_v13  ;;  %v3150_v14 = vpop.eup %3149 }
 0x21f   : > { %v1085_v15 = vadd.f32 %v2511_v20, %v1084_v63  ;;  %v1087_v17 = vsub.f32 1.0, %v3150_v14  ;;  %v1089_v7 = vmul.f32 %v3150_v14, %v4052_v26  ;;  %v4484_v63 = vld [vmem:[%s4989_s4 + $0x2d8] sm:$0xff]  ;;  %v4537_v20 = vld [vmem:[%s4989_s4 + $0x2b0] sm:$0xff] }
 0x220   : > { %3151 = vpow2.f32 %v2567_v21  ;;  %v2568_v56 = vmul.f32 -1.442695, %v1320_v59  ;;  %v4471_v21 = vld [vmem:[%s4989_s4 + $0x2e8] sm:$0xff]  ;;  %v4556_v14 = vld [vmem:[%s4989_s4 + $0x298] sm:$0xff] }
 0x221   : > { %3153 = vtanh.f32 %v1085_v15  ;;  %v4551_v15 = vld [vmem:[%s4989_s4 + $0x288] sm:$0xff]  ;;  %5170 = vst [vmem:[#allocation13_spill] sm:$0xff] %v4556_v14 }
 0x222   : > { %3155 = vpow2.f32 %v2568_v56  ;;  %v4476_v56 = vld [vmem:[%s4989_s4 + $0x2f8] sm:$0xff] }
 0x22d   : > { %v3152_v57 = vpop.eup %3151 }
 0x22e   : > { %v3154_v10 = vpop.eup %3153  ;;  %v1317_v18 = vadd.f32 1.0, %v3152_v57  ;;  %v4563_v57 = vld [vmem:[%s4989_s4 + $0x278] sm:$0xff] }
 0x22f   : > { %v1088_v53 = vmul.f32 %v3154_v10, %v1087_v17  ;;  %v3156_v12 = vpop.eup %3155  ;;  %5171 = vst [vmem:[#allocation14_spill] sm:$0xff] %v4563_v57  ;;  %v1310_v17 = vadd.f32 %v4461_v6, %v1168_v9  ;;  %v4571_v10 = vld [vmem:[%s4989_s4 + $0x270] sm:$0xff]  ;;  %v4584_v6 = vld [vmem:[%s4989_s4 + $0x260] sm:$0xff]  ;;  %v4596_v9 = vld [vmem:[%s4989_s4 + $0x268] sm:$0xff] }
 0x230   : > { %3157 = vrcp.f32 %v1317_v18  ;;  %v1324_v13 = vadd.f32 1.0, %v3156_v12  ;;  %5172 = vst [vmem:[#allocation33_spill] sm:$0xff] %v4571_v10  ;;  %v4576_v18 = vld [vmem:[%s4989_s4 + $0x280] sm:$0xff]  ;;  %5174 = vst [vmem:[#allocation16_spill] sm:$0xff] %v4584_v6  ;;  %v4591_v12 = vld [vmem:[%s4989_s4 + $0x258] sm:$0xff] }
 0x231   : > { %v1090_v2 = vadd.f32 %v1089_v7, %v1088_v53  ;;  %v4504_v53 = vld [vmem:[%s4989_s4 + $0x2c0] sm:$0xff]  ;;  %5173 = vst [vmem:[#allocation15_spill] sm:$0xff] %v4576_v18  ;;  %5175 = vst [vmem:[#allocation36_spill] sm:$0xff] %v4591_v12 }
 0x232   : > { %3159 = vrcp.f32 %v1324_v13  ;;  %5176 = vst [vmem:[#allocation17_spill] sm:$0xff] %v4596_v9  ;;  %v4603_v13 = vld [vmem:[%s4989_s4 + $0x248] sm:$0xff] }
 0x233   : > { %v1099_v59 = vsel %vm1098_vm11, %v1090_v2, 0.0  ;;  %v4479_v62 = vsel %vm1098_vm11, %v1090_v2, %v4052_v26  ;;  %v4497_v26 = vld [vmem:[%s4989_s4 + $0x2e0] sm:$0xff]  ;;  %5177 = vst [vmem:[#allocation19_spill] sm:$0xff] %v4603_v13 }
 0x234   : > { %2514 = vst [vmem:[%s3287_s19 + $0x8] sm:$0xff] %v1099_v59  ;;  %1480 = vmatmul.mubr.f32.vlgmr.msra.gmra.mxu0 %v4479_v62  ;;  %3001 = vmatmul.mubr.f32.vlgmr.msra.gmra.mxu1 %v4479_v62  ;;  %v2517_v2 = vld [vmem:[%s3297_s26 + $0x40] sm:$0xff] }
 0x235   : > { %1659 = vmatpush1.msra.mxu0 %v4471_v21  ;;  %3004 = vmatpush3.msra.mxu1 %v4476_v56 }
 0x236   : > { %1660 = vmatprep.subr.mxu0 %v4484_v63  ;;  %3005 = vmatprep.subr.mxu1 %v5097_v61 }
 0x237   : > { %1661 = vmatpush1.msra.mxu0 %v4492_v24  ;;  %3006 = vmatpush3.msra.mxu1 %v4497_v26 }
 0x238   : > { %1662 = vmatprep.subr.mxu0 %v4504_v53  ;;  %3007 = vmatprep.subr.mxu1 %v5097_v61 }
 0x239   : > { %1663 = vmatpush1.msra.mxu0 %v4511_v16  ;;  %3008 = vmatpush3.msra.mxu1 %v4516_v58 }
 0x23a   : > { %1664 = vmatprep.subr.mxu0 %v4523_v5  ;;  %3009 = vmatprep.subr.mxu1 %v5097_v61 }
 0x23b   : > { %1665 = vmatpush1.msra.mxu0 %v4532_v60  ;;  %3010 = vmatpush3.msra.mxu1 %v4537_v20 }
 0x23c   : > { %1666 = vmatprep.subr.mxu0 %v4544_v8  ;;  %3011 = vmatprep.subr.mxu1 %v5097_v61 }
 0x23d   : > { %v3158_v7 = vpop.eup %3157  ;;  %1667 = vmatpush1.msra.mxu0 %v4551_v15  ;;  %3012 = vmatpush3.msra.mxu1 %v4556_v14  ;;  %v4763_v14 = vld [vmem:[%s4989_s4 + $0x180] sm:$0xff] }
 0x23e   : > { %v1327_v59 = vmul.f32 %v3158_v7, %v1310_v17  ;;  %1668 = vmatprep.subr.mxu0 %v4563_v57  ;;  %3013 = vmatprep.subr.mxu1 %v5097_v61  ;;  %v4610_v7 = vld [vmem:[%s4989_s4 + $0x240] sm:$0xff] }
 0x23f   : > { %1669 = vmatpush1.msra.mxu0 %v4571_v10  ;;  %3014 = vmatpush3.msra.mxu1 %v4576_v18  ;;  %5178 = vst [vmem:[#allocation20_spill] sm:$0xff] %v4610_v7  ;;  %v4615_v10 = vld [vmem:[%s4989_s4 + $0x250] sm:$0xff] }
 0x240   : > { %v1328_v17 = vadd.f32 %v2517_v2, %v1327_v59  ;;  %1670 = vmatprep.subr.mxu0 %v4584_v6  ;;  %3015 = vmatprep.subr.mxu1 %v5097_v61  ;;  %5179 = vst [vmem:[#allocation22_spill] sm:$0xff] %v4615_v10  ;;  %v4622_v2 = vld [vmem:[%s4989_s4 + $0x230] sm:$0xff]  ;;  %v4629_v59 = vld [vmem:[%s4989_s4 + $0x228] sm:$0xff]  ;;  %v4743_v6 = vld [vmem:[%s4989_s4 + $0x198] sm:$0xff] }
 0x241   : > { %1671 = vmatpush1.msra.mxu0 %v4591_v12  ;;  %3016 = vmatpush3.msra.mxu1 %v4596_v9  ;;  %5180 = vst [vmem:[#allocation23_spill] sm:$0xff] %v4622_v2  ;;  %5181 = vst [vmem:[#allocation25_spill] sm:$0xff] %v4629_v59  ;;  %v4634_v12 = vld [vmem:[%s4989_s4 + $0x238] sm:$0xff]  ;;  %v4724_v9 = vld [vmem:[%s4989_s4 + $0x1b0] sm:$0xff] }
 0x242   : > { %3161 = vtanh.f32 %v1328_v17  ;;  %1672 = vmatprep.subr.mxu0 %v4603_v13  ;;  %3017 = vmatprep.subr.mxu1 %v5097_v61  ;;  %5182 = vst [vmem:[#allocation26_spill] sm:$0xff] %v4634_v12  ;;  %v4641_v17 = vld [vmem:[%s4989_s4 + $0x218] sm:$0xff]  ;;  %v4648_v13 = vld [vmem:[%s4989_s4 + $0x210] sm:$0xff]  ;;  %5197 = vst [vmem:[#allocation47_spill] sm:$0xff] %v4743_v6 }
 0x243   : > { %1673 = vmatpush1.msra.mxu0 %v4610_v7  ;;  %3018 = vmatpush3.msra.mxu1 %v4615_v10  ;;  %5183 = vst [vmem:[#allocation28_spill] sm:$0xff] %v4641_v17  ;;  %5184 = vst [vmem:[#allocation29_spill] sm:$0xff] %v4648_v13  ;;  %v4653_v7 = vld [vmem:[%s4989_s4 + $0x220] sm:$0xff]  ;;  %v4667_v10 = vld [vmem:[%s4989_s4 + $0x1f8] sm:$0xff] }
 0x244   : > { %1674 = vmatprep.subr.mxu0 %v4622_v2  ;;  %3019 = vmatprep.subr.mxu1 %v5097_v61  ;;  %5185 = vst [vmem:[#allocation31_spill] sm:$0xff] %v4653_v7  ;;  %v4660_v2 = vld [vmem:[%s4989_s4 + $0x200] sm:$0xff]  ;;  %5187 = vst [vmem:[#allocation34_spill] sm:$0xff] %v4667_v10 }
 0x245   : > { %1675 = vmatpush1.msra.mxu0 %v4629_v59  ;;  %3020 = vmatpush3.msra.mxu1 %v4634_v12  ;;  %5186 = vst [vmem:[#allocation32_spill] sm:$0xff] %v4660_v2  ;;  %v4672_v59 = vld [vmem:[%s4989_s4 + $0x208] sm:$0xff]  ;;  %v4686_v12 = vld [vmem:[%s4989_s4 + $0x1e0] sm:$0xff] }
 0x246   : > { %1676 = vmatprep.subr.mxu0 %v4641_v17  ;;  %3021 = vmatprep.subr.mxu1 %v5097_v61  ;;  %5188 = vst [vmem:[#allocation35_spill] sm:$0xff] %v4672_v59  ;;  %v4679_v17 = vld [vmem:[%s4989_s4 + $0x1e8] sm:$0xff]  ;;  %5190 = vst [vmem:[#allocation38_spill] sm:$0xff] %v4686_v12 }
 0x247   : > { %1677 = vmatpush1.msra.mxu0 %v4648_v13  ;;  %3022 = vmatpush3.msra.mxu1 %v4653_v7  ;;  %5189 = vst [vmem:[#allocation37_spill] sm:$0xff] %v4679_v17  ;;  %v4691_v13 = vld [vmem:[%s4989_s4 + $0x1f0] sm:$0xff]  ;;  %v4705_v7 = vld [vmem:[%s4989_s4 + $0x1c8] sm:$0xff] }
 0x248   : > { %1678 = vmatprep.subr.mxu0 %v4660_v2  ;;  %3023 = vmatprep.subr.mxu1 %v5097_v61  ;;  %5191 = vst [vmem:[#allocation39_spill] sm:$0xff] %v4691_v13  ;;  %v4698_v2 = vld [vmem:[%s4989_s4 + $0x1d0] sm:$0xff]  ;;  %5193 = vst [vmem:[#allocation43_spill] sm:$0xff] %v4705_v7 }
 0x249   : > { %1679 = vmatpush1.msra.mxu0 %v4667_v10  ;;  %3024 = vmatpush3.msra.mxu1 %v4672_v59  ;;  %5192 = vst [vmem:[#allocation42_spill] sm:$0xff] %v4698_v2  ;;  %v4710_v10 = vld [vmem:[%s4989_s4 + $0x1d8] sm:$0xff]  ;;  %v3160_v59 = vpop.eup %3159 }
 0x24a   : > { %1680 = vmatprep.subr.mxu0 %v4679_v17  ;;  %3025 = vmatprep.subr.mxu1 %v5097_v61  ;;  %5194 = vst [vmem:[#allocation44_spill] sm:$0xff] %v4710_v10  ;;  %v4717_v17 = vld [vmem:[%s4989_s4 + $0x1b8] sm:$0xff]  ;;  %v1332_v57 = vmul.f32 %v3160_v59, %v4123_v19 }
 0x24b   : > { %1681 = vmatpush1.msra.mxu0 %v4686_v12  ;;  %3026 = vmatpush3.msra.mxu1 %v4691_v13  ;;  %5195 = vst [vmem:[#allocation45_spill] sm:$0xff] %v4717_v17  ;;  %v4729_v12 = vld [vmem:[%s4989_s4 + $0x1c0] sm:$0xff]  ;;  %v1330_v13 = vsub.f32 1.0, %v3160_v59 }
 0x24c   : > { %1682 = vmatprep.subr.mxu0 %v4698_v2  ;;  %3027 = vmatprep.subr.mxu1 %v5097_v61  ;;  %v4736_v2 = vld [vmem:[%s4989_s4 + $0x1a0] sm:$0xff] }
 0x24d   : > { %1683 = vmatpush1.msra.mxu0 %v4705_v7  ;;  %3028 = vmatpush3.msra.mxu1 %v4710_v10  ;;  %5196 = vst [vmem:[#allocation46_spill] sm:$0xff] %v4736_v2  ;;  %v4748_v7 = vld [vmem:[%s4989_s4 + $0x1a8] sm:$0xff] }
 0x24e   : > { %1684 = vmatprep.subr.mxu0 %v4717_v17  ;;  %3029 = vmatprep.subr.mxu1 %v5097_v61  ;;  %v4755_v17 = vld [vmem:[%s4989_s4 + $0x188] sm:$0xff] }
 0x24f   : > { %v3162_v10 = vpop.eup %3161  ;;  %1685 = vmatpush1.msra.mxu0 %v4724_v9  ;;  %3030 = vmatpush3.msra.mxu1 %v4729_v12 }
 0x250   : > { %v1331_v18 = vmul.f32 %v3162_v10, %v1330_v13  ;;  %1686 = vmatprep.subr.mxu0 %v4736_v2  ;;  %3031 = vmatprep.subr.mxu1 %v5097_v61  ;;  %v4770_v10 = vld [vmem:[%s4989_s4 + $0x190] sm:$0xff]  ;;  %v1340_v13 = vpop.permute.xlu1 %1339 }
 0x251   : > { %1687 = vmatpush1.msra.mxu0 %v4743_v6  ;;  %3032 = vmatpush3.msra.mxu1 %v4748_v7  ;;  %vm1341_vm12 = vcmp.eq.s32.totalorder %v1340_v13, 1 }
 0x252   : > { %v1333_v59 = vadd.f32 %v1332_v57, %v1331_v18  ;;  %1688 = vmatprep.subr.mxu0 %v4755_v17  ;;  %3033 = vmatprep.subr.mxu1 %v5097_v61 }
 0x253   : > { %1689 = vmatpush1.msra.mxu0 %v4763_v14  ;;  %1722 = vmatprep.mubr.f32.mxu0 %v5097_v61 }
 0x254   : > { %v1342_v2 = vsel %vm1341_vm12, %v1333_v59, 0.0  ;;  %v4777_v6 = vsel %vm1341_vm12, %v1333_v59, %v4123_v19  ;;  %3034 = vmatpush3.msra.mxu1 %v4770_v10  ;;  %3035 = vmatprep.mubr.msk.f32.mxu1 %vm3213_vm1, %v5097_v61  ;;  %v5198_v19 = vld [vmem:[#allocation4_spill] sm:$0xff] }
 0x255   : > { %2569 = vst [vmem:[%s3302_s10 + $0x10] sm:$0xff] %v1342_v2  ;;  %1723 = vmatmul.mubr.f32.vlgmr.msra.gmra.mxu0 %v4777_v6  ;;  %3036 = vmatmul.mubr.f32.vlgmr.msra.gmra.mxu1 %v4777_v6  ;;  %v2576_v2 = vld [vmem:[%s3297_s26 + $0x18] sm:$0xff] }
 0x256   : > { %1901 = vmatprep.subr.mxu0 %v4138_v1  ;;  %3038 = vmatprep.subr.mxu1 %v5097_v61  ;;  %v5199_v1 = vld [vmem:[#allocation18_spill] sm:$0xff] }
 0x257   : > { %1902 = vmatpush1.msra.mxu0 %v4144_v3  ;;  %3039 = vmatpush3.msra.mxu1 %v4149_v4  ;;  %v5200_v3 = vld [vmem:[#allocation5_spill] sm:$0xff]  ;;  %v5201_v4 = vld [vmem:[#allocation6_spill] sm:$0xff] }
 0x258   : > { %1903 = vmatprep.subr.mxu0 %v4156_v22  ;;  %3040 = vmatprep.subr.mxu1 %v5097_v61  ;;  %v5202_v22 = vld [vmem:[#allocation21_spill] sm:$0xff] }
 0x259   : > { %1904 = vmatpush1.msra.mxu0 %v4163_v23  ;;  %3041 = vmatpush3.msra.mxu1 %v4168_v25  ;;  %v5203_v23 = vld [vmem:[#allocation7_spill] sm:$0xff]  ;;  %v5204_v25 = vld [vmem:[#allocation8_spill] sm:$0xff] }
 0x25a   : > { %1905 = vmatprep.subr.mxu0 %v4175_v0  ;;  %3042 = vmatprep.subr.mxu1 %v5097_v61  ;;  %v5205_v0 = vld [vmem:[#allocation24_spill] sm:$0xff] }
 0x25b   : > { %1906 = vmatpush1.msra.mxu0 %v4182_v27  ;;  %3043 = vmatpush3.msra.mxu1 %v4187_v28  ;;  %v5206_v27 = vld [vmem:[#allocation9_spill] sm:$0xff]  ;;  %v5207_v28 = vld [vmem:[#allocation10_spill] sm:$0xff] }
 0x25c   : > { %1907 = vmatprep.subr.mxu0 %v4194_v52  ;;  %3044 = vmatprep.subr.mxu1 %v5097_v61  ;;  %v5208_v52 = vld [vmem:[#allocation27_spill] sm:$0xff] }
 0x25d   : > { %1908 = vmatpush1.msra.mxu0 %v4201_v29  ;;  %3045 = vmatpush3.msra.mxu1 %v4206_v30  ;;  %v5209_v29 = vld [vmem:[#allocation11_spill] sm:$0xff]  ;;  %v5210_v30 = vld [vmem:[#allocation12_spill] sm:$0xff] }
 0x25e   : > { %1909 = vmatprep.subr.mxu0 %v4213_v54  ;;  %3046 = vmatprep.subr.mxu1 %v5097_v61  ;;  %v5211_v54 = vld [vmem:[#allocation30_spill] sm:$0xff] }
 0x25f   : > { %1910 = vmatpush1.msra.mxu0 %v4220_v31  ;;  %3047 = vmatpush3.msra.mxu1 %v4225_v11  ;;  %v1398_v31 = vld [vmem:[%s4990_s5] sm:$0x7]  ;;  %v5212_v11 = vld [vmem:[#allocation40_spill] sm:$0xff] }
 0x260   : > { %1911 = vmatprep.subr.mxu0 %v4232_v32  ;;  %3048 = vmatprep.subr.mxu1 %v5097_v61  ;;  %v1403_v32 = vrot.slane %v1398_v31, %v5212_v11  ;;  %v1411_v57 = vrot.slane %v1398_v31, %v4039_v39 }
 0x261   : > { %1912 = vmatpush1.msra.mxu0 %v4239_v55  ;;  %3049 = vmatpush3.msra.mxu1 %v4244_v33  ;;  %v2570_v55 = vld [vmem:[%s3292_s22 + $0x30] sm:$0xff] }
 0x262   : > { %1913 = vmatprep.subr.mxu0 %v4251_v34  ;;  %3050 = vmatprep.subr.mxu1 %v5097_v61 }
 0x263   : > { %1914 = vmatpush1.msra.mxu0 %v4258_v35  ;;  %3051 = vmatpush3.msra.mxu1 %v4263_v36  ;;  %v5213_v36 = vld [vmem:[#allocation41_spill] sm:$0xff] }
 0x264   : > { %1915 = vmatprep.subr.mxu0 %v4270_v37  ;;  %3052 = vmatprep.subr.mxu1 %v5097_v61  ;;  %v1407_v37 = vrot.slane %v1398_v31, %v5213_v36 }
 0x265   : > { %1916 = vmatpush1.msra.mxu0 %v4277_v38  ;;  %3053 = vmatpush3.msra.mxu1 %v4282_v40 }
 0x266   : > { %1917 = vmatprep.subr.mxu0 %v4289_v41  ;;  %3054 = vmatprep.subr.mxu1 %v5097_v61 }
 0x267   : > { %1918 = vmatpush1.msra.mxu0 %v4296_v42  ;;  %3055 = vmatpush3.msra.mxu1 %v4301_v43 }
 0x268   : > { %1919 = vmatprep.subr.mxu0 %v4308_v44  ;;  %3056 = vmatprep.subr.mxu1 %v5097_v61  ;;  %v2571_v44 = vld [vmem:[%s3292_s22 + $0x38] sm:$0xff] }
 0x269   : > { %1920 = vmatpush1.msra.mxu0 %v4315_v45  ;;  %3057 = vmatpush3.msra.mxu1 %v4320_v46 }
 0x26a   : > { %1921 = vmatprep.subr.mxu0 %v4327_v47  ;;  %3058 = vmatprep.subr.mxu1 %v5097_v61 }
 0x26b   : > { %1922 = vmatpush1.msra.mxu0 %v4334_v48  ;;  %3059 = vmatpush3.msra.mxu1 %v4339_v49  ;;  %v2627_v49 = vld [vmem:[%s4990_s5 + $0x3] sm:$0x7] }
 0x26c   : > { %1923 = vmatprep.subr.mxu0 %v4346_v50  ;;  %3060 = vmatprep.subr.mxu1 %v5097_v61 }
 0x26d   : > { %1924 = vmatpush1.msra.mxu0 %v4353_v51  ;;  %3061 = vmatpush3.msra.mxu1 %v5198_v19  ;;  %v1646_v51 = vrot.slane %v2627_v49, %v5212_v11 }
 0x26e   : > { %1925 = vmatprep.subr.mxu0 %v5199_v1  ;;  %3062 = vmatprep.subr.mxu1 %v5097_v61  ;;  %v1650_v1 = vrot.slane %v2627_v49, %v5213_v36 }
 0x26f   : > { %1926 = vmatpush1.msra.mxu0 %v5200_v3  ;;  %3063 = vmatpush3.msra.mxu1 %v5201_v4 }
 0x270   : > { %1927 = vmatprep.subr.mxu0 %v5202_v22  ;;  %3064 = vmatprep.subr.mxu1 %v5097_v61 }
 0x271   : > { %1928 = vmatpush1.msra.mxu0 %v5203_v23  ;;  %3065 = vmatpush3.msra.mxu1 %v5204_v25  ;;  %v2572_v25 = vld [vmem:[%s3292_s22 + $0x40] sm:$0xff] }
 0x272   : > { %1929 = vmatprep.subr.mxu0 %v5205_v0  ;;  %3066 = vmatprep.subr.mxu1 %v5097_v61 }
 0x273   : > { %1930 = vmatpush1.msra.mxu0 %v5206_v27  ;;  %3067 = vmatpush3.msra.mxu1 %v5207_v28 }
 0x274   : > { %1931 = vmatprep.subr.mxu0 %v5208_v52  ;;  %3068 = vmatprep.subr.mxu1 %v5097_v61 }
 0x275   : > { %1932 = vmatpush1.msra.mxu0 %v5209_v29  ;;  %1965 = vmatprep.mubr.f32.mxu0 %v5097_v61 }
 0x276   : > { %3069 = vmatpush3.msra.mxu1 %v5210_v30  ;;  %3070 = vmatprep.mubr.msk.f32.mxu1 %vm3213_vm1, %v5097_v61  ;;  %v2577_v30 = vld [vmem:[%s3297_s26 + $0x20] sm:$0xff] }
 0x277   : > { %2143 = vmatprep.subr.mxu0 %v5211_v54  ;;  %3073 = vmatprep.subr.mxu1 %v5097_v61 }
 0x2f4   : > { %v1481_v33 = vpop.f32.mrf.mxu0  ;;  %v1552_v34 = vpop.f32.mrf.mxu1 }
 0x2f5   : > { %v1482_v35 = vadd.f32 %v1481_v33, %v1403_v32  ;;  %v1553_v3 = vadd.f32 %v1552_v34, %v1411_v57  ;;  %v5228_v57 = vld [vmem:[#allocation29_spill] sm:$0xff] }
 0x2f6   : > { %v1483_v38 = vpop.f32.mrf.mxu0  ;;  %v3002_v40 = vpop.f32.mrf.mxu1 }
 0x2f7   : > { %v1556_v41 = vadd.f32 %v2570_v55, %v1482_v35  ;;  %v1484_v43 = vadd.f32 %v1483_v38, %v1407_v37  ;;  %v1583_v40 = vpop.permute.xlu0 %1582 }
 0x2f8   : > { %vm1584_vm13 = vcmp.eq.s32.totalorder %v1583_v40, 1  ;;  %v2632_v40 = vld [vmem:[%s3292_s22 + $0x50] sm:$0xff] }
 0x2f9   : > { %v2573_v42 = vmul.f32 -1.442695, %v1556_v41  ;;  %v1563_v45 = vadd.f32 %v2571_v44, %v1484_v43 }
 0x2fb   : > { %3163 = vpow2.f32 %v2573_v42  ;;  %v2574_v46 = vmul.f32 -1.442695, %v1563_v45  ;;  %v5221_v45 = vld [vmem:[#allocation19_spill] sm:$0xff] }
 0x2fd   : > { %3165 = vpow2.f32 %v2574_v46  ;;  %v5222_v46 = vld [vmem:[#allocation20_spill] sm:$0xff] }
 0x308   : > { %v3164_v47 = vpop.eup %3163 }
 0x309   : > { %v1560_v48 = vadd.f32 1.0, %v3164_v47  ;;  %v5223_v47 = vld [vmem:[#allocation22_spill] sm:$0xff] }
 0x30a   : > { %v3166_v50 = vpop.eup %3165 }
 0x30b   : > { %3167 = vrcp.f32 %v1560_v48  ;;  %v1567_v18 = vadd.f32 1.0, %v3166_v50  ;;  %v5224_v48 = vld [vmem:[#allocation23_spill] sm:$0xff]  ;;  %v5226_v50 = vld [vmem:[#allocation26_spill] sm:$0xff] }
 0x30d   : > { %3169 = vrcp.f32 %v1567_v18  ;;  %v5229_v18 = vld [vmem:[#allocation31_spill] sm:$0xff] }
 0x315   : > { %v1724_v13 = vpop.f32.mrf.mxu0  ;;  %v1795_v59 = vpop.f32.mrf.mxu1 }
 0x316   : > { %v1725_v19 = vadd.f32 %v1724_v13, %v1646_v51  ;;  %v5227_v51 = vld [vmem:[#allocation28_spill] sm:$0xff]  ;;  %v5231_v13 = vld [vmem:[#allocation34_spill] sm:$0xff] }
 0x317   : > { %v1726_v4 = vpop.f32.mrf.mxu0  ;;  %v3037_v22 = vpop.f32.mrf.mxu1 }
 0x318   : > { %v3168_v23 = vpop.eup %3167  ;;  %v1799_v0 = vadd.f32 %v2576_v2, %v1725_v19  ;;  %v1727_v52 = vadd.f32 %v1726_v4, %v1650_v1  ;;  %v5230_v2 = vld [vmem:[#allocation32_spill] sm:$0xff]  ;;  %v5233_v19 = vld [vmem:[#allocation37_spill] sm:$0xff]  ;;  %v5235_v4 = vld [vmem:[#allocation39_spill] sm:$0xff] }
 0x319   : > { %v1570_v27 = vmul.f32 %v3168_v23, %v1553_v3  ;;  %v5234_v3 = vld [vmem:[#allocation38_spill] sm:$0xff]  ;;  %v5237_v23 = vld [vmem:[#allocation43_spill] sm:$0xff] }
 0x31a   : > { %v2628_v28 = vmul.f32 -1.442695, %v1799_v0  ;;  %v1806_v54 = vadd.f32 %v2577_v30, %v1727_v52  ;;  %v3170_v32 = vpop.eup %3169  ;;  %v5236_v22 = vld [vmem:[#allocation42_spill] sm:$0xff]  ;;  %v5239_v0 = vld [vmem:[#allocation45_spill] sm:$0xff] }
 0x31b   : > { %v1571_v29 = vadd.f32 %v2572_v25, %v1570_v27  ;;  %v1573_v33 = vsub.f32 1.0, %v3170_v32  ;;  %v1575_v38 = vmul.f32 %v3170_v32, %v4479_v62  ;;  %v5238_v25 = vld [vmem:[#allocation44_spill] sm:$0xff]  ;;  %v5240_v52 = vld [vmem:[#allocation46_spill] sm:$0xff] }
 0x31c   : > { %3171 = vpow2.f32 %v2628_v28  ;;  %v2629_v31 = vmul.f32 -1.442695, %v1806_v54  ;;  %v5241_v54 = vld [vmem:[#allocation47_spill] sm:$0xff] }
 0x31d   : > { %3173 = vtanh.f32 %v1571_v29 }
 0x31e   : > { %3175 = vpow2.f32 %v2629_v31  ;;  %v1826_v31 = vpop.permute.xlu1 %1825 }
 0x31f   : > { %vm1827_vm14 = vcmp.eq.s32.totalorder %v1826_v31, 1 }
 0x329   : > { %v3172_v55 = vpop.eup %3171 }
 0x32a   : > { %v3174_v34 = vpop.eup %3173  ;;  %v1803_v35 = vadd.f32 1.0, %v3172_v55 }
 0x32b   : > { %v1574_v37 = vmul.f32 %v3174_v34, %v1573_v33  ;;  %v3176_v44 = vpop.eup %3175 }
 0x32c   : > { %3177 = vrcp.f32 %v1803_v35 }
 0x32d   : > { %v1576_v41 = vadd.f32 %v1575_v38, %v1574_v37 }
 0x32f   : > { %v1585_v42 = vsel %vm1584_vm13, %v1576_v41, 0.0  ;;  %v4872_v43 = vsel %vm1584_vm13, %v1576_v41, %v4479_v62  ;;  %v1654_v62 = vrot.slane %v2627_v49, %v4039_v39  ;;  %v5225_v49 = vld [vmem:[#allocation25_spill] sm:$0xff] }
 0x330   : > { %2575 = vst [vmem:[%s3287_s19 + $0x10] sm:$0xff] %v1585_v42  ;;  %1966 = vmatmul.mubr.f32.vlgmr.msra.gmra.mxu0 %v4872_v43  ;;  %3071 = vmatmul.mubr.f32.vlgmr.msra.gmra.mxu1 %v4872_v43 }
 0x331   : > { %2144 = vmatpush1.msra.mxu0 %v4471_v21  ;;  %3074 = vmatpush3.msra.mxu1 %v4476_v56  ;;  %v1810_v21 = vadd.f32 1.0, %v3176_v44  ;;  %v1796_v56 = vadd.f32 %v1795_v59, %v1654_v62  ;;  %v5232_v59 = vld [vmem:[#allocation35_spill] sm:$0xff] }
 0x332   : > { %2145 = vmatprep.subr.mxu0 %v4484_v63  ;;  %3075 = vmatprep.subr.mxu1 %v5097_v61 }
 0x333   : > { %2146 = vmatpush1.msra.mxu0 %v4492_v24  ;;  %3076 = vmatpush3.msra.mxu1 %v4497_v26  ;;  %v2578_v24 = vld [vmem:[%s3297_s26 + $0x28] sm:$0xff]  ;;  %v5214_v26 = vld [vmem:[#allocation13_spill] sm:$0xff]  ;;  %3179 = vrcp.f32 %v1810_v21  ;;  %v2685_v21 = vld [vmem:[%s4990_s5 + $0x3] sm:$0x7] }
 0x334   : > { %2147 = vmatprep.subr.mxu0 %v4504_v53  ;;  %3077 = vmatprep.subr.mxu1 %v5097_v61 }
 0x335   : > { %2148 = vmatpush1.msra.mxu0 %v4511_v16  ;;  %3078 = vmatpush3.msra.mxu1 %v4516_v58  ;;  %v5215_v16 = vld [vmem:[#allocation14_spill] sm:$0xff]  ;;  %v5216_v58 = vld [vmem:[#allocation33_spill] sm:$0xff] }
 0x336   : > { %2149 = vmatprep.subr.mxu0 %v4523_v5  ;;  %3079 = vmatprep.subr.mxu1 %v5097_v61  ;;  %v5217_v5 = vld [vmem:[#allocation15_spill] sm:$0xff] }
 0x337   : > { %2150 = vmatpush1.msra.mxu0 %v4532_v60  ;;  %3080 = vmatpush3.msra.mxu1 %v4537_v20  ;;  %v5218_v20 = vld [vmem:[#allocation16_spill] sm:$0xff] }
 0x338   : > { %2151 = vmatprep.subr.mxu0 %v4544_v8  ;;  %3081 = vmatprep.subr.mxu1 %v5097_v61  ;;  %v5219_v8 = vld [vmem:[#allocation36_spill] sm:$0xff] }
 0x339   : > { %v3178_v63 = vpop.eup %3177  ;;  %2152 = vmatpush1.msra.mxu0 %v4551_v15  ;;  %3082 = vmatpush3.msra.mxu1 %v5214_v26  ;;  %v5220_v15 = vld [vmem:[#allocation17_spill] sm:$0xff] }
 0x33a   : > { %v1813_v53 = vmul.f32 %v3178_v63, %v1796_v56  ;;  %2153 = vmatprep.subr.mxu0 %v5215_v16  ;;  %3083 = vmatprep.subr.mxu1 %v5097_v61  ;;  %v2131_v63 = vrot.slane %v2685_v21, %v5212_v11 }
 0x33b   : > { %2154 = vmatpush1.msra.mxu0 %v5216_v58  ;;  %3084 = vmatpush3.msra.mxu1 %v5217_v5 }
 0x33c   : > { %v1814_v60 = vadd.f32 %v2578_v24, %v1813_v53  ;;  %2155 = vmatprep.subr.mxu0 %v5218_v20  ;;  %3085 = vmatprep.subr.mxu1 %v5097_v61  ;;  %v2075_v53 = vld [vmem:[%s3297_s26] sm:$0xff] }
 0x33d   : > { %2156 = vmatpush1.msra.mxu0 %v5219_v8  ;;  %3086 = vmatpush3.msra.mxu1 %v5220_v15 }
 0x33e   : > { %3181 = vtanh.f32 %v1814_v60  ;;  %2157 = vmatprep.subr.mxu0 %v5221_v45  ;;  %3087 = vmatprep.subr.mxu1 %v5097_v61  ;;  %v2135_v60 = vrot.slane %v2685_v21, %v5213_v36 }
 0x33f   : > { %2158 = vmatpush1.msra.mxu0 %v5222_v46  ;;  %3088 = vmatpush3.msra.mxu1 %v5223_v47  ;;  %v2633_v46 = vld [vmem:[%s3292_s22 + $0x58] sm:$0xff] }
 0x340   : > { %2159 = vmatprep.subr.mxu0 %v5224_v48  ;;  %3089 = vmatprep.subr.mxu1 %v5097_v61  ;;  %v3180_v1 = vpop.eup %3179 }
 0x341   : > { %2160 = vmatpush1.msra.mxu0 %v5225_v49  ;;  %3090 = vmatpush3.msra.mxu1 %v5226_v50  ;;  %v1816_v27 = vsub.f32 1.0, %v3180_v1  ;;  %v1818_v30 = vmul.f32 %v3180_v1, %v4777_v6  ;;  %v2069_v1 = vpop.permute.xlu0 %2068 }
 0x342   : > { %2161 = vmatprep.subr.mxu0 %v5227_v51  ;;  %3091 = vmatprep.subr.mxu1 %v5097_v61  ;;  %v2076_v51 = vld [vmem:[%s3297_s26 + $0x8] sm:$0xff]  ;;  %vm2070_vm15 = vcmp.eq.s32.totalorder %v2069_v1, 1 }
 0x343   : > { %2162 = vmatpush1.msra.mxu0 %v5228_v57  ;;  %3092 = vmatpush3.msra.mxu1 %v5229_v18 }
 0x344   : > { %2163 = vmatprep.subr.mxu0 %v5230_v2  ;;  %3093 = vmatprep.subr.mxu1 %v5097_v61 }
 0x345   : > { %2164 = vmatpush1.msra.mxu0 %v5231_v13  ;;  %3094 = vmatpush3.msra.mxu1 %v5232_v59 }
 0x346   : > { %2165 = vmatprep.subr.mxu0 %v5233_v19  ;;  %3095 = vmatprep.subr.mxu1 %v5097_v61 }
 0x347   : > { %2166 = vmatpush1.msra.mxu0 %v5234_v3  ;;  %3096 = vmatpush3.msra.mxu1 %v5235_v4 }
 0x348   : > { %2167 = vmatprep.subr.mxu0 %v5236_v22  ;;  %3097 = vmatprep.subr.mxu1 %v5097_v61 }
 0x349   : > { %2168 = vmatpush1.msra.mxu0 %v5237_v23  ;;  %3098 = vmatpush3.msra.mxu1 %v5238_v25 }
 0x34a   : > { %2169 = vmatprep.subr.mxu0 %v5239_v0  ;;  %3099 = vmatprep.subr.mxu1 %v5097_v61 }
 0x34b   : > { %v3182_v28 = vpop.eup %3181  ;;  %2170 = vmatpush1.msra.mxu0 %v4724_v9  ;;  %3100 = vmatpush3.msra.mxu1 %v4729_v12 }
 0x34c   : > { %2171 = vmatprep.subr.mxu0 %v5240_v52  ;;  %3101 = vmatprep.subr.mxu1 %v5097_v61  ;;  %v1817_v29 = vmul.f32 %v3182_v28, %v1816_v27  ;;  %v2139_v27 = vrot.slane %v2685_v21, %v4039_v39 }
 0x34d   : > { %2172 = vmatpush1.msra.mxu0 %v5241_v54  ;;  %3102 = vmatpush3.msra.mxu1 %v4748_v7 }
 0x34e   : > { %2173 = vmatprep.subr.mxu0 %v4755_v17  ;;  %3103 = vmatprep.subr.mxu1 %v5097_v61  ;;  %v1819_v9 = vadd.f32 %v1818_v30, %v1817_v29  ;;  %v2077_v30 = vld [vmem:[%s3297_s26 + $0x10] sm:$0xff] }
 0x34f   : > { %2174 = vmatpush1.msra.mxu0 %v4763_v14  ;;  %2207 = vmatprep.mubr.f32.mxu0 %v5097_v61  ;;  %v1884_v14 = vld [vmem:[%s4990_s5] sm:$0x7] }
 0x350   : > { %3104 = vmatpush3.msra.mxu1 %v4770_v10  ;;  %3105 = vmatprep.mubr.msk.f32.mxu1 %vm3213_vm1, %v5097_v61  ;;  %v1828_v12 = vsel %vm1827_vm14, %v1819_v9, 0.0  ;;  %v4946_v7 = vsel %vm1827_vm14, %v1819_v9, %v4777_v6  ;;  %v1889_v17 = vrot.slane %v1884_v14, %v5212_v11  ;;  %v2631_v10 = vld [vmem:[%s3292_s22 + $0x48] sm:$0xff]  ;;  %v1893_v33 = vrot.slane %v1884_v14, %v5213_v36 }
 0x351   : > { %2630 = vst [vmem:[%s3302_s10 + $0x8] sm:$0xff] %v1828_v12  ;;  %2208 = vmatmul.mubr.f32.vlgmr.msra.gmra.mxu0 %v4946_v7  ;;  %3106 = vmatmul.mubr.f32.vlgmr.msra.gmra.mxu1 %v4946_v7  ;;  %v1897_v24 = vrot.slane %v1884_v14, %v4039_v39 }
 0x3f0   : > { %v1967_v32 = vpop.f32.mrf.mxu0  ;;  %v2038_v55 = vpop.f32.mrf.mxu1 }
 0x3f1   : > { %v1968_v61 = vadd.f32 %v1967_v32, %v1889_v17  ;;  %v2039_v20 = vadd.f32 %v2038_v55, %v1897_v24  ;;  %v2310_v17 = vpop.permute.xlu1 %2309 }
 0x3f2   : > { %v1969_v6 = vpop.f32.mrf.mxu0  ;;  %v3072_v34 = vpop.f32.mrf.mxu1  ;;  %vm2311_vm0 = vcmp.eq.s32.totalorder %v2310_v17, 1 }
 0x3f3   : > { %v2042_v35 = vadd.f32 %v2631_v10, %v1968_v61  ;;  %v1970_v38 = vadd.f32 %v1969_v6, %v1893_v33 }
 0x3f5   : > { %v2634_v37 = vmul.f32 -1.442695, %v2042_v35  ;;  %v2049_v41 = vadd.f32 %v2632_v40, %v1970_v38 }
 0x3f7   : > { %3183 = vpow2.f32 %v2634_v37  ;;  %v2635_v42 = vmul.f32 -1.442695, %v2049_v41 }
 0x3f9   : > { %3185 = vpow2.f32 %v2635_v42 }
 0x404   : > { %v3184_v44 = vpop.eup %3183 }
 0x405   : > { %v2046_v62 = vadd.f32 1.0, %v3184_v44 }
 0x406   : > { %v3186_v56 = vpop.eup %3185 }
 0x407   : > { %3187 = vrcp.f32 %v2046_v62  ;;  %v2053_v26 = vadd.f32 1.0, %v3186_v56 }
 0x409   : > { %3189 = vrcp.f32 %v2053_v26 }
 0x411   : > { %v2209_v16 = vpop.f32.mrf.mxu0  ;;  %v2280_v58 = vpop.f32.mrf.mxu1 }
 0x412   : > { %v2210_v5 = vadd.f32 %v2209_v16, %v2131_v63  ;;  %v2281_v52 = vadd.f32 %v2280_v58, %v2139_v27 }
 0x413   : > { %v2211_v8 = vpop.f32.mrf.mxu0  ;;  %v3107_v15 = vpop.f32.mrf.mxu1 }
 0x414   : > { %v3188_v45 = vpop.eup %3187  ;;  %v2284_v47 = vadd.f32 %v2210_v5, %v2075_v53  ;;  %v2212_v11 = vadd.f32 %v2211_v8, %v2135_v60 }
 0x415   : > { %v2056_v48 = vmul.f32 %v3188_v45, %v2039_v20 }
 0x416   : > { %v2686_v49 = vmul.f32 -1.442695, %v2284_v47  ;;  %v2291_v57 = vadd.f32 %v2212_v11, %v2076_v51  ;;  %v3190_v2 = vpop.eup %3189 }
 0x417   : > { %v2057_v50 = vadd.f32 %v2633_v46, %v2056_v48  ;;  %v2059_v13 = vsub.f32 1.0, %v3190_v2  ;;  %v2061_v4 = vmul.f32 %v3190_v2, %v4872_v43 }
 0x418   : > { %3191 = vpow2.f32 %v2686_v49  ;;  %v2687_v18 = vmul.f32 -1.442695, %v2291_v57 }
 0x419   : > { %3193 = vtanh.f32 %v2057_v50 }
 0x41a   : > { %3195 = vpow2.f32 %v2687_v18 }
 0x425   : > { %v3192_v36 = vpop.eup %3191 }
 0x426   : > { %v3194_v59 = vpop.eup %3193  ;;  %v2288_v19 = vadd.f32 1.0, %v3192_v36 }
 0x427   : > { %v2060_v3 = vmul.f32 %v3194_v59, %v2059_v13  ;;  %v3196_v0 = vpop.eup %3195 }
 0x428   : > { %3197 = vrcp.f32 %v2288_v19  ;;  %v2295_v28 = vadd.f32 1.0, %v3196_v0 }
 0x429   : > { %v2062_v22 = vadd.f32 %v2061_v4, %v2060_v3 }
 0x42a   : > { %3199 = vrcp.f32 %v2295_v28 }
 0x42b   : > { %v2071_v23 = vsel %vm2070_vm15, %v2062_v22, 0.0  ;;  %v2074_v25 = vsel %vm2070_vm15, %v2062_v22, %v4872_v43 }
 0x42c   : > { %2636 = vst [vmem:[%s3287_s19 + $0x18] sm:$0xff] %v2071_v23  ;;  %2315 = vst [vmem:[#allocation2] sm:$0xff] %v2074_v25 }
 0x435   : > { %v3198_v29 = vpop.eup %3197 }
 0x436   : > { %v2298_v54 = vmul.f32 %v3198_v29, %v2281_v52 }
 0x437   : > { %v3200_v9 = vpop.eup %3199 }
 0x438   : > { %v2299_v31 = vadd.f32 %v2298_v54, %v2077_v30  ;;  %v2301_v12 = vsub.f32 1.0, %v3200_v9  ;;  %v2303_v43 = vmul.f32 %v3200_v9, %v4946_v7 }
 0x43a   : > { %3201 = vtanh.f32 %v2299_v31 }
 0x447   : > { %v3202_v14 = vpop.eup %3201 }
 0x448   : > { %v2302_v10 = vmul.f32 %v3202_v14, %v2301_v12 }
 0x449   : > { %2320 = sbr.rel (%p2688_p6) target bundleno = 1103 (0x44f), region = 52 }
 0x44a   : > { %v2304_v32 = vadd.f32 %v2303_v43, %v2302_v10 }
 0x44c   : > { %v2312_v55 = vsel %vm2311_vm0, %v2304_v32, 0.0  ;;  %v2314_v39 = vsel %vm2311_vm0, %v2304_v32, %v4946_v7 }
 0x44d   : > { %2313 = vst [vmem:[%s3302_s10] sm:$0xff] %v2312_v55  ;;  %2316 = vst [vmem:[#allocation3] sm:$0xff] %v2314_v39 }
 0x44e   : > { %2321 = vst [vmem:[%s4993_s8] sm:$0xff] %v2074_v25  ;;  %2689 = vst [vmem:[%s4993_s8 + $0x8] sm:$0xff] %v2314_v39 }
 0x44f PF: > { %s19_s27 = sadd.s32 1, %s3209_s27  }
 0x450   : > { %p16_p7 = scmp.ge.s32.totalorder %s19_s27, 4  }
 0x452   :  { %18 = sbr.rel (!%p16_p7) target bundleno = 1 (0x1), region = 121 }

</bundles_post_ra>
